<compile_context>
chip_gen: v7x
topology: tpu7x:2x2x1
jax: 0.10.0
libtpu: 0.0.40
codegen_flags: <defaults>
</compile_context>

<pallas_src>
import functools

import jax
import jax.numpy as jnp
from jax.experimental import pallas as pl
from jax.experimental.pallas import tpu as pltpu

_EPS = 1e-3  # CharbonnierLoss default eps


# --------------------------------------------------------------------------
# Pallas kernel
# --------------------------------------------------------------------------
def _dwt_charbonnier_kernel(x_ref, y_ref, out_ref, *, half_w):
    """One grid step.

    x_ref / y_ref : (TR, L) block, L = 2*W.  Each row is one image row-pair:
                    lanes [0, W) = even image row, lanes [W, 2W) = odd row.
    out_ref       : (8, L) float32 block of partial sums (row 0 carries the
                    data, rows 1..7 are zero) — one block per grid step.
    """
    W = half_w
    L = x_ref.shape[-1]  # == 2 * W

    xb = x_ref[...].astype(jnp.float32)
    yb = y_ref[...].astype(jnp.float32)
    d = (xb - yb) * jnp.float32(0.5)          # Haar linearity: work on (x-y)/2 only

    lane = jax.lax.broadcasted_iota(jnp.int32, (1, L), 1)

    # ---- pair even/odd image rows (the two lane-halves of each block row) --
    # A rotation by L/2 gives the same result for either rotate direction.
    dr = pltpu.roll(d, shift=W, axis=1)       # lane j <-> lane (j + W) mod L
    sgn = jnp.where(lane < W, jnp.float32(1.0), jnp.float32(-1.0))
    # lanes [0, W)  : c = d_even + d_odd          (per column)
    # lanes [W, 2W) : c = d_odd  - d_even         (sign irrelevant after squaring)
    c = d + sgn * dr

    # ---- pair adjacent columns (2w, 2w+1) with a rotate by 1 --------------
    # Roll an iota by the same amount: the mask is then correct regardless of
    # the rotate direction convention, and each quad is counted exactly once.
    c1 = pltpu.roll(c, shift=1, axis=1)
    lane1 = pltpu.roll(lane, shift=1, axis=1)
    partner = lane + 1 - 2 * (lane % 2)       # even j -> j+1, odd j -> j-1
    valid = lane1 == partner

    eps2 = jnp.float32(_EPS * _EPS)
    a = c + c1                                # LL (lower half) / LH (upper half)
    b = c1 - c                                # HL (lower half) / HH (upper half)
    terms = jnp.sqrt(a * a + eps2) + jnp.sqrt(b * b + eps2)
    terms = jnp.where(valid, terms, jnp.float32(0.0))

    # ---- per-block partial sums -------------------------------------------
    col_sums = jnp.sum(terms, axis=0, keepdims=True)          # (1, L)
    row_idx = jax.lax.broadcasted_iota(jnp.int32, (8, L), 0)
    out_ref[...] = jnp.where(row_idx == 0, col_sums, jnp.float32(0.0))


# --------------------------------------------------------------------------
# Wrapper
# --------------------------------------------------------------------------
def _pick_block_rows(num_rows, row_lanes, itemsize, target_bytes=1 << 20):
    """Largest sublane-aligned divisor of num_rows with a tile <= ~1 MiB."""
    sub = max(8, 32 // itemsize)              # 8 rows for f32, 16 for bf16, ...
    cap = max(sub, min(num_rows, target_bytes // max(1, itemsize * row_lanes)))
    best = None
    for cand in range(sub, cap + 1, sub):
        if num_rows % cand == 0:
            best = cand
    return best if best is not None else num_rows  # full-array block fallback


def dwt_loss(x, y):
    """DWTLoss.forward(x, y) == CharbonnierLoss(dwt_init(x), dwt_init(y))."""
    assert x.shape == y.shape, (x.shape, y.shape)
    N, C, H, W = x.shape
    assert H % 2 == 0 and W % 2 == 0, "DWT requires even spatial dims"

    R = N * C * (H // 2)                      # one row per (even, odd) image-row pair
    L = 2 * W                                 # [even image row | odd image row]
    # Free, layout-preserving reshapes — no transpose, no extra HBM copy.
    # (Best lowering/perf when 2*W is a multiple of 128; always lane-denser
    #  than the old per-channel (Hh, Wh) blocks.)
    x2 = x.reshape(R, L)
    y2 = y.reshape(R, L)

    itemsize = jnp.dtype(x.dtype).itemsize
    TR = _pick_block_rows(R, L, itemsize)
    grid = (R // TR,)
    n_elems = N * C * H * W                   # == size of the DWT output

    kernel = functools.partial(_dwt_charbonnier_kernel, half_w=W)
    partials = pl.pallas_call(
        kernel,
        out_shape=jax.ShapeDtypeStruct((8 * grid[0], L), jnp.float32),
        grid=grid,
        in_specs=[
            pl.BlockSpec((TR, L), lambda i: (i, 0)),
            pl.BlockSpec((TR, L), lambda i: (i, 0)),
        ],
        out_specs=pl.BlockSpec((8, L), lambda i: (i, 0)),
        compiler_params=pltpu.CompilerParams(
            dimension_semantics=("parallel",),        # per-block partials: safe & v7x 2-TC
            vmem_limit_bytes=32 * 1024 * 1024,
        ),
        cost_estimate=pl.CostEstimate(
            flops=14 * n_elems,
            transcendentals=2 * n_elems,
            bytes_accessed=2 * n_elems * itemsize + 4 * 8 * grid[0] * L,
        ),
    )(x2, y2)

    # mean over the DWT output (N, 4C, H/2, W/2) -> N*C*H*W elements
    return jnp.sum(partials) / jnp.float32(n_elems)


# --------------------------------------------------------------------------
# Pure-JAX reference (mirrors the PyTorch code) for correctness checking
# --------------------------------------------------------------------------
def _dwt_init_ref(x):
    x01 = x[:, :, 0::2, :] / 2
    x02 = x[:, :, 1::2, :] / 2
    x1 = x01[:, :, :, 0::2]
    x2 = x02[:, :, :, 0::2]
    x3 = x01[:, :, :, 1::2]
    x4 = x02[:, :, :, 1::2]
    ll = x1 + x2 + x3 + x4
    hl = -x1 - x2 + x3 + x4
    lh = -x1 + x2 - x3 + x4
    hh = x1 - x2 - x3 + x4
    return jnp.concatenate([ll, hl, lh, hh], axis=1)


def _dwt_loss_ref(x, y):
    d = _dwt_init_ref(x) - _dwt_init_ref(y)
    return jnp.mean(jnp.sqrt(d * d + _EPS * _EPS))


# --------------------------------------------------------------------------
if __name__ == "__main__":
    # DWTLoss has no trainable parameters; only inputs are needed.
    key = jax.random.PRNGKey(0)
    kx, ky = jax.random.split(key)
    # Small demo shape; spatial=64 keeps the lane axis (2*W = 128) aligned.
    N, C, H, W = 2, 4, 64, 64
    x = jax.random.normal(kx, (N, C, H, W), dtype=jnp.float32)
    y = jax.random.normal(ky, (N, C, H, W), dtype=jnp.float32)

    loss = jax.block_until_ready(dwt_loss(x, y))
    ref = jax.block_until_ready(_dwt_loss_ref(x, y))

    assert jnp.allclose(loss, ref, rtol=1e-4, atol=1e-6), (loss, ref)
    print("KERNEL_OK")
</pallas_src>

<mosaic_0001>
module attributes {stable_mosaic.version = 11 : i64} {
  func.func @_dwt_charbonnier_kernel(%arg0: i32, %arg1: memref<256x128xf32, #tpu.memory_space<vmem>>, %arg2: memref<256x128xf32, #tpu.memory_space<vmem>>, %arg3: memref<8x128xf32, #tpu.memory_space<vmem>>) attributes {dimension_semantics = [#tpu.dimension_semantics<parallel>], iteration_bounds = array<i64: 1>, scalar_prefetch = 0 : i64, scratch_operands = 0 : i64, tpu.core_type = #tpu.core_type<tc>, window_params = [{transform_indices = @transform_0, window_bounds = array<i64: 256, 128>}, {transform_indices = @transform_1, window_bounds = array<i64: 256, 128>}, {transform_indices = @transform_2, window_bounds = array<i64: 8, 128>}]} {
    %c0 = arith.constant 0 : index
    %c0_0 = arith.constant 0 : index
    %0 = vector.load %arg1[%c0, %c0_0] : memref<256x128xf32, #tpu.memory_space<vmem>>, vector<256x128xf32>
    %c0_1 = arith.constant 0 : index
    %c0_2 = arith.constant 0 : index
    %1 = vector.load %arg2[%c0_1, %c0_2] : memref<256x128xf32, #tpu.memory_space<vmem>>, vector<256x128xf32>
    %2 = arith.subf %0, %1 : vector<256x128xf32>
    %cst = arith.constant 5.000000e-01 : f32
    %3 = vector.broadcast %cst : f32 to vector<256x128xf32>
    %4 = arith.mulf %2, %3 : vector<256x128xf32>
    %5 = tpu.iota {dimensions = array<i32: 1>} : vector<1x128xi32>
    %c64_i32 = arith.constant 64 : i32
    %6 = tpu.dynamic_rotate %4 by %c64_i32 dim 1 : vector<256x128xf32>, i32 -> vector<256x128xf32>
    %c64_i32_3 = arith.constant 64 : i32
    %7 = vector.broadcast %c64_i32_3 : i32 to vector<1x128xi32>
    %8 = arith.cmpi slt, %5, %7 : vector<1x128xi32>
    %cst_4 = arith.constant 1.000000e+00 : f32
    %cst_5 = arith.constant -1.000000e+00 : f32
    %9 = vector.broadcast %cst_4 : f32 to vector<1x128xf32>
    %10 = vector.broadcast %cst_5 : f32 to vector<1x128xf32>
    %11 = arith.select %8, %9, %10 : vector<1x128xi1>, vector<1x128xf32>
    %12 = vector.broadcast %11 : vector<1x128xf32> to vector<256x128xf32>
    %13 = arith.mulf %12, %6 : vector<256x128xf32>
    %14 = arith.addf %4, %13 : vector<256x128xf32>
    %c1_i32 = arith.constant 1 : i32
    %15 = tpu.dynamic_rotate %14 by %c1_i32 dim 1 : vector<256x128xf32>, i32 -> vector<256x128xf32>
    %c1_i32_6 = arith.constant 1 : i32
    %16 = tpu.dynamic_rotate %5 by %c1_i32_6 dim 1 : vector<1x128xi32>, i32 -> vector<1x128xi32>
    %c1_i32_7 = arith.constant 1 : i32
    %17 = vector.broadcast %c1_i32_7 : i32 to vector<1x128xi32>
    %18 = arith.addi %5, %17 : vector<1x128xi32>
    %c2_i32 = arith.constant 2 : i32
    %c0_i32 = arith.constant 0 : i32
    %19 = arith.cmpi eq, %c2_i32, %c0_i32 : i32
    %c1_i32_8 = arith.constant 1 : i32
    %20 = arith.select %19, %c1_i32_8, %c2_i32 : i32
    %21 = vector.broadcast %20 : i32 to vector<1x128xi32>
    %22 = arith.remsi %5, %21 : vector<1x128xi32>
    %c0_i32_9 = arith.constant 0 : i32
    %23 = vector.broadcast %c0_i32_9 : i32 to vector<1x128xi32>
    %24 = arith.cmpi ne, %22, %23 : vector<1x128xi32>
    %c0_i32_10 = arith.constant 0 : i32
    %25 = vector.broadcast %c0_i32_10 : i32 to vector<1x128xi32>
    %26 = arith.cmpi slt, %22, %25 : vector<1x128xi32>
    %c0_i32_11 = arith.constant 0 : i32
    %27 = arith.cmpi slt, %20, %c0_i32_11 : i32
    %28 = vector.broadcast %27 : i1 to vector<1x128xi1>
    %29 = vector.broadcast %28 : vector<1x128xi1> to vector<1x128xi1>
    %30 = arith.xori %26, %29 : vector<1x128xi1>
    %31 = arith.andi %30, %24 : vector<1x128xi1>
    %32 = vector.broadcast %20 : i32 to vector<1x128xi32>
    %33 = arith.addi %22, %32 : vector<1x128xi32>
    %34 = arith.select %31, %33, %22 : vector<1x128xi1>, vector<1x128xi32>
    %c2_i32_12 = arith.constant 2 : i32
    %35 = vector.broadcast %c2_i32_12 : i32 to vector<1x128xi32>
    %36 = arith.muli %35, %34 : vector<1x128xi32>
    %37 = arith.subi %18, %36 : vector<1x128xi32>
    %38 = arith.cmpi eq, %16, %37 : vector<1x128xi32>
    %39 = arith.addf %14, %15 : vector<256x128xf32>
    %40 = arith.subf %15, %14 : vector<256x128xf32>
    %41 = arith.mulf %39, %39 : vector<256x128xf32>
    %cst_13 = arith.constant 9.99999997E-7 : f32
    %42 = vector.broadcast %cst_13 : f32 to vector<256x128xf32>
    %43 = arith.addf %41, %42 : vector<256x128xf32>
    %44 = math.sqrt %43 : vector<256x128xf32>
    %45 = arith.mulf %40, %40 : vector<256x128xf32>
    %cst_14 = arith.constant 9.99999997E-7 : f32
    %46 = vector.broadcast %cst_14 : f32 to vector<256x128xf32>
    %47 = arith.addf %45, %46 : vector<256x128xf32>
    %48 = math.sqrt %47 : vector<256x128xf32>
    %49 = arith.addf %44, %48 : vector<256x128xf32>
    %cst_15 = arith.constant 0.000000e+00 : f32
    %50 = vector.shape_cast %38 : vector<1x128xi1> to vector<1x128xi1>
    %51 = vector.broadcast %50 : vector<1x128xi1> to vector<256x128xi1>
    %52 = vector.broadcast %cst_15 : f32 to vector<256x128xf32>
    %53 = arith.select %51, %49, %52 : vector<256x128xi1>, vector<256x128xf32>
    %cst_16 = arith.constant dense<0.000000e+00> : vector<128xf32>
    %54 = vector.multi_reduction <add>, %53, %cst_16 [0] : vector<256x128xf32> to vector<128xf32>
    %55 = vector.shape_cast %54 : vector<128xf32> to vector<1x128xf32>
    %56 = tpu.iota {dimensions = array<i32: 0>} : vector<8x128xi32>
    %c0_i32_17 = arith.constant 0 : i32
    %57 = vector.broadcast %c0_i32_17 : i32 to vector<8x128xi32>
    %58 = arith.cmpi eq, %56, %57 : vector<8x128xi32>
    %cst_18 = arith.constant 0.000000e+00 : f32
    %59 = vector.shape_cast %55 : vector<1x128xf32> to vector<1x128xf32>
    %60 = vector.broadcast %59 : vector<1x128xf32> to vector<8x128xf32>
    %61 = vector.broadcast %cst_18 : f32 to vector<8x128xf32>
    %62 = arith.select %58, %60, %61 : vector<8x128xi1>, vector<8x128xf32>
    %c0_19 = arith.constant 0 : index
    %c0_20 = arith.constant 0 : index
    %63 = vector.load %arg3[%c0_19, %c0_20] : memref<8x128xf32, #tpu.memory_space<vmem>>, vector<8x128xf32>
    tpu.vector_store %arg3[%c0_19, %c0_20], %62 {strides = array<i32>} : memref<8x128xf32, #tpu.memory_space<vmem>>, vector<8x128xf32>,
    return
  }
  func.func @transform_0(%arg0: i32) -> (i32, i32) {
    %c0_i32 = arith.constant 0 : i32
    %c0_i32_0 = arith.constant 0 : i32
    return %arg0, %c0_i32 : i32, i32
  }
  func.func @transform_1(%arg0: i32) -> (i32, i32) {
    %c0_i32 = arith.constant 0 : i32
    %c0_i32_0 = arith.constant 0 : i32
    return %arg0, %c0_i32 : i32, i32
  }
  func.func @transform_2(%arg0: i32) -> (i32, i32) {
    %c0_i32 = arith.constant 0 : i32
    %c0_i32_0 = arith.constant 0 : i32
    return %arg0, %c0_i32 : i32, i32
  }
}

</mosaic_0001>

<bundles_post_ra>
// kernel: tpu_custom_call.1
= control target key start
LH: loop header
LB: loop body
LE: loop exit
PB: predicated region body
PF: predicated region fallthrough
CT: control target
= control target key end

     0   :  { %7 = vsyncpa [#allocation3], 0  ;;  %s2656_s0 = inlined_call_operand.hbm [shape: f32[256,128], index: 0, kind: input, shape index: {}]   ;;  %s2657_s1 = inlined_call_operand.hbm [shape: f32[256,128], index: 1, kind: input, shape index: {}]   ;;  %s2658_s2 = inlined_call_operand.hbm [shape: f32[8,128], index: 2, kind: output, shape index: {}]  }
   0x1   :  { %8 = vsyncpa [#allocation6], 0 }
   0x2   :  { %9 = vsyncpa [#allocation4], 0  ;;  %s1359_s9 = smov [#allocation2]   ;;  %s1287_s13 = scalar_lea.hbm %s2656_s0, 4096 }
   0x3   :  { %s15_s10 = sshll.u32 %s1359_s9, 4  ;;  %p1288_p0 = scmp.ne.s32.totalorder %s2656_s0, %s1287_s13  ;;  %s16_s10 = int_to_ptr.vmem [resolvable:$true] %s15_s10 }
   0x4   :  { %p1291_p1 = scmp.lt.u32.totalorder %s1287_s13, %s2656_s0 }
   0x6   :  { %p1293_p2 = pnand %p1291_p1, %p1288_p0 }
   0x8   :  { %1296 = shalt.err (!%p1293_p2)
}
   0x9   :  { %s1297_s18 = scalar_lea.vmem %s16_s10, 4096  ;;  %p1302_p4 = scmp.lt.s32.totalorder %s16_s10, %s16_s10 }
   0xa   :  { %p1298_p3 = scmp.ne.s32.totalorder %s16_s10, %s1297_s18  ;;  %p1303_p5 = scmp.lt.s32.totalorder %s1297_s18, %s1297_s18 }
   0xc   :  { %p1304_p6 = por %p1303_p5, %p1302_p4 }
   0xe   :  { %p1305_p7 = pnand %p1304_p6, %p1298_p3 }
  0x10   :  { %1308 = shalt.err (!%p1305_p7)
}
  0x11   :  { %s1360_s19 = smov 128   ;;  %s1361_s20 = smov 8  }
  0x12   :  { %21 = dma.hbm_to_vmem [thread:$0]  %s2656_s0, 4096, %s16_s10, [#allocation3], %s1360_s19, %s1360_s19, %s1361_s20  }
  0x13   :  { %s1362_s23 = smov [#allocation5]   ;;  %s1309_s27 = scalar_lea.hbm %s2657_s1, 4096 }
  0x14   :  { %s27_s24 = sshll.u32 %s1362_s23, 4  ;;  %p1310_p8 = scmp.ne.s32.totalorder %s2657_s1, %s1309_s27  ;;  %s28_s24 = int_to_ptr.vmem [resolvable:$true] %s27_s24 }
  0x15   :  { %p1313_p9 = scmp.lt.u32.totalorder %s1309_s27, %s2657_s1 }
  0x17   :  { %p1315_p10 = pnand %p1313_p9, %p1310_p8 }
  0x19   :  { %1318 = shalt.err (!%p1315_p10)
}
  0x1a   :  { %s1319_s4 = scalar_lea.vmem %s28_s24, 4096  ;;  %p1324_p12 = scmp.lt.s32.totalorder %s28_s24, %s28_s24 }
  0x1b   :  { %p1320_p11 = scmp.ne.s32.totalorder %s28_s24, %s1319_s4  ;;  %p1325_p13 = scmp.lt.s32.totalorder %s1319_s4, %s1319_s4 }
  0x1d   :  { %p1326_p0 = por %p1325_p13, %p1324_p12 }
  0x1f   :  { %p1327_p1 = pnand %p1326_p0, %p1320_p11 }
  0x21   :  { %1330 = shalt.err (!%p1327_p1)
}
  0x22   :  { %33 = dma.hbm_to_vmem [thread:$0]  %s2657_s1, 4096, %s28_s24, [#allocation6], %s1360_s19, %s1360_s19, %s1361_s20  }
  0x23   :  { %1353 = dma.done.wait [#allocation3], 4096  }
  0x24   :  { %1354 = vsyncadd [#allocation3], 4294963200 }
  0x25   :  { %1355 = dma.done.wait [#allocation6], 4096  }
  0x26   :  { %1356 = vsyncadd [#allocation6], 4294963200  ;;  %v40_v0 = vld [vmem:[#allocation2] sm:$0xff]  ;;  %v42_v2 = vld [vmem:[#allocation2 + $0x10] sm:$0xff]  ;;  %s1363_s1 = smov 64   ;;  %s1365_s6 = smov 1  }
  0x27   :  { %v72_v1 = vld [vmem:[#allocation5] sm:$0xff]  ;;  %v74_v4 = vld [vmem:[#allocation5 + $0x10] sm:$0xff]  ;;  %v41_v5 = vld [vmem:[#allocation2 + $0x8] sm:$0xff]  ;;  %s1367_s7 = smov [#allocation7]  }
  0x28   :  { %v104_v3 = vsub.f32 %v40_v0, %v72_v1  ;;  %v73_v6 = vld [vmem:[#allocation5 + $0x8] sm:$0xff]  ;;  %v106_v7 = vsub.f32 %v42_v2, %v74_v4  ;;  %v43_v9 = vld [vmem:[#allocation2 + $0x18] sm:$0xff]  ;;  %v44_v11 = vld [vmem:[#allocation2 + $0x20] sm:$0xff]  ;;  %s1140_s8 = sshll.u32 %s1367_s7, 4  ;;  %s1141_s8 = int_to_ptr.vmem [resolvable:$true] %s1140_s8 }
  0x29   :  { %v105_v8 = vsub.f32 %v41_v5, %v73_v6  ;;  %v75_v10 = vld [vmem:[#allocation5 + $0x18] sm:$0xff]  ;;  %v76_v14 = vld [vmem:[#allocation5 + $0x20] sm:$0xff]  ;;  %v45_v15 = vld [vmem:[#allocation2 + $0x28] sm:$0xff]  ;;  %s1331_s9 = scalar_lea.vmem %s1141_s8, 128  ;;  %p1336_p3 = scmp.lt.s32.totalorder %s1141_s8, %s1141_s8 }
  0x2a   :  { %v1407_v12 = vmul.f32 0.5, %v104_v3  ;;  %v107_v13 = vsub.f32 %v43_v9, %v75_v10  ;;  %v77_v16 = vld [vmem:[#allocation5 + $0x28] sm:$0xff]  ;;  %v1409_v17 = vmul.f32 0.5, %v106_v7  ;;  %v108_v19 = vsub.f32 %v44_v11, %v76_v14  ;;  %v46_v22 = vld [vmem:[#allocation2 + $0x30] sm:$0xff]  ;;  %v47_v24 = vld [vmem:[#allocation2 + $0x38] sm:$0xff]  ;;  %p1332_p2 = scmp.ne.s32.totalorder %s1141_s8, %s1331_s9  ;;  %p1337_p4 = scmp.lt.s32.totalorder %s1331_s9, %s1331_s9 }
  0x2b   :  { %v1413_v18 = vmul.f32 0.5, %v105_v8  ;;  %v109_v21 = vsub.f32 %v45_v15, %v77_v16  ;;  %v78_v23 = vld [vmem:[#allocation5 + $0x30] sm:$0xff]  ;;  %v79_v25 = vld [vmem:[#allocation5 + $0x38] sm:$0xff]  ;;  %v48_v30 = vld [vmem:[#allocation2 + $0x40] sm:$0xff] }
  0x2c   :  { %170 = vrot.lane.b32.xlu0 %v1407_v12, %s1363_s1  ;;  %174 = vrot.lane.b32.xlu1 %v1409_v17, %s1363_s1  ;;  %v1417_v20 = vmul.f32 0.5, %v107_v13  ;;  %v1421_v26 = vmul.f32 0.5, %v108_v19  ;;  %v110_v27 = vsub.f32 %v46_v22, %v78_v23  ;;  %v111_v29 = vsub.f32 %v47_v24, %v79_v25  ;;  %v80_v31 = vld [vmem:[#allocation5 + $0x40] sm:$0xff]  ;;  %v49_v32 = vld [vmem:[#allocation2 + $0x48] sm:$0xff]  ;;  %v50_v38 = vld [vmem:[#allocation2 + $0x50] sm:$0xff]  ;;  %p1338_p5 = por %p1337_p4, %p1336_p3 }
  0x2d   :  { %v1425_v28 = vmul.f32 0.5, %v109_v21  ;;  %v81_v33 = vld [vmem:[#allocation5 + $0x48] sm:$0xff]  ;;  %v112_v35 = vsub.f32 %v48_v30, %v80_v31  ;;  %v82_v39 = vld [vmem:[#allocation5 + $0x50] sm:$0xff]  ;;  %v51_v40 = vld [vmem:[#allocation2 + $0x58] sm:$0xff] }
  0x2e   :  { %v1429_v34 = vmul.f32 0.5, %v110_v27  ;;  %v1433_v36 = vmul.f32 0.5, %v111_v29  ;;  %v113_v37 = vsub.f32 %v49_v32, %v81_v33  ;;  %v83_v41 = vld [vmem:[#allocation5 + $0x58] sm:$0xff]  ;;  %v114_v43 = vsub.f32 %v50_v38, %v82_v39  ;;  %v52_v46 = vld [vmem:[#allocation2 + $0x60] sm:$0xff]  ;;  %v53_v48 = vld [vmem:[#allocation2 + $0x68] sm:$0xff]  ;;  %p1339_p6 = pnand %p1338_p5, %p1332_p2 }
  0x2f   :  { %v1437_v42 = vmul.f32 0.5, %v112_v35  ;;  %v115_v45 = vsub.f32 %v51_v40, %v83_v41  ;;  %v84_v47 = vld [vmem:[#allocation5 + $0x60] sm:$0xff]  ;;  %v85_v49 = vld [vmem:[#allocation5 + $0x68] sm:$0xff]  ;;  %v54_v54 = vld [vmem:[#allocation2 + $0x70] sm:$0xff] }
  0x30   :  { %172 = vrot.lane.b32.xlu0 %v1413_v18, %s1363_s1  ;;  %176 = vrot.lane.b32.xlu1 %v1417_v20, %s1363_s1  ;;  %v1441_v44 = vmul.f32 0.5, %v113_v37  ;;  %v1445_v50 = vmul.f32 0.5, %v114_v43  ;;  %v116_v51 = vsub.f32 %v52_v46, %v84_v47  ;;  %v117_v53 = vsub.f32 %v53_v48, %v85_v49  ;;  %v86_v55 = vld [vmem:[#allocation5 + $0x70] sm:$0xff]  ;;  %v55_v56 = vld [vmem:[#allocation2 + $0x78] sm:$0xff]  ;;  %v56_v62 = vld [vmem:[#allocation2 + $0x80] sm:$0xff] }
  0x31   :  { %v1449_v52 = vmul.f32 0.5, %v115_v45  ;;  %v87_v57 = vld [vmem:[#allocation5 + $0x78] sm:$0xff]  ;;  %v118_v59 = vsub.f32 %v54_v54, %v86_v55  ;;  %v88_v63 = vld [vmem:[#allocation5 + $0x80] sm:$0xff]  ;;  %v57_v0 = vld [vmem:[#allocation2 + $0x88] sm:$0xff] }
  0x32   :  { %v1453_v58 = vmul.f32 0.5, %v116_v51  ;;  %v1457_v60 = vmul.f32 0.5, %v117_v53  ;;  %v119_v61 = vsub.f32 %v55_v56, %v87_v57  ;;  %v89_v1 = vld [vmem:[#allocation5 + $0x88] sm:$0xff]  ;;  %v120_v3 = vsub.f32 %v56_v62, %v88_v63  ;;  %v58_v6 = vld [vmem:[#allocation2 + $0x90] sm:$0xff]  ;;  %v59_v8 = vld [vmem:[#allocation2 + $0x98] sm:$0xff] }
  0x33   :  { %v1461_v2 = vmul.f32 0.5, %v118_v59  ;;  %v121_v5 = vsub.f32 %v57_v0, %v89_v1  ;;  %v90_v7 = vld [vmem:[#allocation5 + $0x90] sm:$0xff]  ;;  %v91_v9 = vld [vmem:[#allocation5 + $0x98] sm:$0xff]  ;;  %v60_v15 = vld [vmem:[#allocation2 + $0xa0] sm:$0xff] }
  0x34   :  { %178 = vrot.lane.b32.xlu0 %v1421_v26, %s1363_s1  ;;  %180 = vrot.lane.b32.xlu1 %v1425_v28, %s1363_s1  ;;  %v1465_v4 = vmul.f32 0.5, %v119_v61  ;;  %v1469_v10 = vmul.f32 0.5, %v120_v3  ;;  %v122_v11 = vsub.f32 %v58_v6, %v90_v7  ;;  %v123_v14 = vsub.f32 %v59_v8, %v91_v9  ;;  %v92_v16 = vld [vmem:[#allocation5 + $0xa0] sm:$0xff]  ;;  %v61_v19 = vld [vmem:[#allocation2 + $0xa8] sm:$0xff]  ;;  %v62_v27 = vld [vmem:[#allocation2 + $0xb0] sm:$0xff] }
  0x35   :  { %v1473_v13 = vmul.f32 0.5, %v121_v5  ;;  %v93_v21 = vld [vmem:[#allocation5 + $0xa8] sm:$0xff]  ;;  %v124_v23 = vsub.f32 %v60_v15, %v92_v16  ;;  %v94_v29 = vld [vmem:[#allocation5 + $0xb0] sm:$0xff]  ;;  %v63_v30 = vld [vmem:[#allocation2 + $0xb8] sm:$0xff] }
  0x36   :  { %v1477_v22 = vmul.f32 0.5, %v122_v11  ;;  %v1481_v24 = vmul.f32 0.5, %v123_v14  ;;  %v125_v25 = vsub.f32 %v61_v19, %v93_v21  ;;  %v95_v31 = vld [vmem:[#allocation5 + $0xb8] sm:$0xff]  ;;  %v126_v33 = vsub.f32 %v62_v27, %v94_v29  ;;  %v64_v38 = vld [vmem:[#allocation2 + $0xc0] sm:$0xff]  ;;  %v65_v40 = vld [vmem:[#allocation2 + $0xc8] sm:$0xff] }
  0x37   :  { %v1485_v32 = vmul.f32 0.5, %v124_v23  ;;  %v127_v37 = vsub.f32 %v63_v30, %v95_v31  ;;  %v96_v39 = vld [vmem:[#allocation5 + $0xc0] sm:$0xff]  ;;  %v97_v41 = vld [vmem:[#allocation5 + $0xc8] sm:$0xff]  ;;  %v66_v48 = vld [vmem:[#allocation2 + $0xd0] sm:$0xff]  ;;  %v168_v23 = vlaneseq  ;;  %v1364_v27 = vmov -1.0  }
  0x38   :  { %182 = vrot.lane.b32.xlu0 %v1429_v34, %s1363_s1  ;;  %184 = vrot.lane.b32.xlu1 %v1433_v36, %s1363_s1  ;;  %v1489_v35 = vmul.f32 0.5, %v125_v25  ;;  %v1493_v43 = vmul.f32 0.5, %v126_v33  ;;  %v128_v45 = vsub.f32 %v64_v38, %v96_v39  ;;  %v129_v47 = vsub.f32 %v65_v40, %v97_v41  ;;  %v98_v49 = vld [vmem:[#allocation5 + $0xd0] sm:$0xff]  ;;  %v67_v51 = vld [vmem:[#allocation2 + $0xd8] sm:$0xff]  ;;  %v68_v59 = vld [vmem:[#allocation2 + $0xe0] sm:$0xff] }
  0x39   :  { %v1497_v46 = vmul.f32 0.5, %v127_v37  ;;  %v99_v53 = vld [vmem:[#allocation5 + $0xd8] sm:$0xff]  ;;  %v130_v55 = vsub.f32 %v66_v48, %v98_v49  ;;  %v100_v61 = vld [vmem:[#allocation5 + $0xe0] sm:$0xff]  ;;  %v69_v62 = vld [vmem:[#allocation2 + $0xe8] sm:$0xff]  ;;  %v1536_v25 = vand.u32 127, %v168_v23 }
  0x3a   :  { %v1501_v54 = vmul.f32 0.5, %v128_v45  ;;  %v1505_v56 = vmul.f32 0.5, %v129_v47  ;;  %v131_v57 = vsub.f32 %v67_v51, %v99_v53  ;;  %v101_v63 = vld [vmem:[#allocation5 + $0xe8] sm:$0xff]  ;;  %v132_v1 = vsub.f32 %v68_v59, %v100_v61  ;;  %v70_v6 = vld [vmem:[#allocation2 + $0xf0] sm:$0xff]  ;;  %v71_v8 = vld [vmem:[#allocation2 + $0xf8] sm:$0xff] }
  0x3b   :  { %v1509_v0 = vmul.f32 0.5, %v130_v55  ;;  %v133_v5 = vsub.f32 %v69_v62, %v101_v63  ;;  %v102_v7 = vld [vmem:[#allocation5 + $0xf0] sm:$0xff]  ;;  %v103_v9 = vld [vmem:[#allocation5 + $0xf8] sm:$0xff]  ;;  %vm234_vm0 = vcmp.lt.s32.totalorder %v1536_v25, 64 }
  0x3c   :  { %186 = vrot.lane.b32.xlu0 %v1437_v42, %s1363_s1  ;;  %188 = vrot.lane.b32.xlu1 %v1441_v44, %s1363_s1  ;;  %v1513_v3 = vmul.f32 0.5, %v131_v57  ;;  %v1517_v11 = vmul.f32 0.5, %v132_v1  ;;  %v134_v14 = vsub.f32 %v70_v6, %v102_v7  ;;  %v135_v16 = vsub.f32 %v71_v8, %v103_v9 }
  0x3d   :  { %v1521_v15 = vmul.f32 0.5, %v133_v5  ;;  %v1539_v29 = vsel %vm234_vm0, 1.0, %v1364_v27 }
  0x3e   :  { %v1525_v19 = vmul.f32 0.5, %v134_v14  ;;  %v1529_v21 = vmul.f32 0.5, %v135_v16 }
  0x40   :  { %190 = vrot.lane.b32.xlu0 %v1445_v50, %s1363_s1  ;;  %192 = vrot.lane.b32.xlu1 %v1449_v52, %s1363_s1 }
  0x44   :  { %194 = vrot.lane.b32.xlu0 %v1453_v58, %s1363_s1  ;;  %196 = vrot.lane.b32.xlu1 %v1457_v60, %s1363_s1 }
  0x48   :  { %198 = vrot.lane.b32.xlu0 %v1461_v2, %s1363_s1  ;;  %200 = vrot.lane.b32.xlu1 %v1465_v4, %s1363_s1 }
  0x4c   :  { %202 = vrot.lane.b32.xlu0 %v1469_v10, %s1363_s1  ;;  %204 = vrot.lane.b32.xlu1 %v1473_v13, %s1363_s1 }
  0x50   :  { %206 = vrot.lane.b32.xlu0 %v1477_v22, %s1363_s1  ;;  %208 = vrot.lane.b32.xlu1 %v1481_v24, %s1363_s1 }
  0x54   :  { %210 = vrot.lane.b32.xlu0 %v1485_v32, %s1363_s1  ;;  %212 = vrot.lane.b32.xlu1 %v1489_v35, %s1363_s1 }
  0x58   :  { %214 = vrot.lane.b32.xlu0 %v1493_v43, %s1363_s1  ;;  %216 = vrot.lane.b32.xlu1 %v1497_v46, %s1363_s1 }
  0x5c   :  { %218 = vrot.lane.b32.xlu0 %v1501_v54, %s1363_s1  ;;  %220 = vrot.lane.b32.xlu1 %v1505_v56, %s1363_s1 }
  0x60   :  { %222 = vrot.lane.b32.xlu0 %v1509_v0, %s1363_s1  ;;  %224 = vrot.lane.b32.xlu1 %v1513_v3, %s1363_s1 }
  0x64   :  { %226 = vrot.lane.b32.xlu0 %v1517_v11, %s1363_s1  ;;  %228 = vrot.lane.b32.xlu1 %v1521_v15, %s1363_s1 }
  0x68   :  { %230 = vrot.lane.b32.xlu0 %v1525_v19, %s1363_s1  ;;  %232 = vrot.lane.b32.xlu1 %v1529_v21, %s1363_s1 }
  0x9e   :  { %v171_v30 = vpop.permute.xlu0 %170  ;;  %v175_v33 = vpop.permute.xlu1 %174 }
  0x9f   :  { %v236_v31 = vmul.f32 %v1539_v29, %v171_v30  ;;  %v238_v37 = vmul.f32 %v1539_v29, %v175_v33 }
  0xa1   :  { %v1544_v38 = vadd.f32 %v236_v31, %v1407_v12  ;;  %v1547_v40 = vadd.f32 %v238_v37, %v1409_v17 }
  0xa2   :  { %v173_v39 = vpop.permute.xlu0 %172  ;;  %v177_v45 = vpop.permute.xlu1 %176 }
  0xa3   :  { %v237_v41 = vmul.f32 %v1539_v29, %v173_v39  ;;  %300 = vrot.lane.b32.xlu0 %v1544_v38, %s1365_s6  ;;  %v239_v47 = vmul.f32 %v1539_v29, %v177_v45 }
  0xa5   :  { %v1554_v48 = vadd.f32 %v237_v41, %v1413_v18  ;;  %v1557_v12 = vadd.f32 %v239_v47, %v1417_v20 }
  0xa6   :  { %v179_v49 = vpop.permute.xlu0 %178  ;;  %v181_v17 = vpop.permute.xlu1 %180 }
  0xa7   :  { %v240_v51 = vmul.f32 %v1539_v29, %v179_v49  ;;  %304 = vrot.lane.b32.xlu0 %v1547_v40, %s1365_s6  ;;  %302 = vrot.lane.b32.xlu1 %v1554_v48, %s1365_s6  ;;  %v241_v53 = vmul.f32 %v1539_v29, %v181_v17 }
  0xa9   :  { %v1566_v55 = vadd.f32 %v240_v51, %v1421_v26  ;;  %v1569_v57 = vadd.f32 %v241_v53, %v1425_v28 }
  0xaa   :  { %v183_v18 = vpop.permute.xlu0 %182  ;;  %v185_v59 = vpop.permute.xlu1 %184 }
  0xab   :  { %v242_v20 = vmul.f32 %v1539_v29, %v183_v18  ;;  %306 = vrot.lane.b32.xlu1 %v1557_v12, %s1365_s6  ;;  %308 = vrot.lane.b32.xlu0 %v1566_v55, %s1365_s6  ;;  %v243_v61 = vmul.f32 %v1539_v29, %v185_v59 }
  0xad   :  { %v1578_v62 = vadd.f32 %v242_v20, %v1429_v34  ;;  %v1581_v63 = vadd.f32 %v243_v61, %v1433_v36 }
  0xae   :  { %v187_v26 = vpop.permute.xlu0 %186  ;;  %v189_v1 = vpop.permute.xlu1 %188 }
  0xaf   :  { %v244_v28 = vmul.f32 %v1539_v29, %v187_v26  ;;  %310 = vrot.lane.b32.xlu1 %v1569_v57, %s1365_s6  ;;  %312 = vrot.lane.b32.xlu0 %v1578_v62, %s1365_s6  ;;  %v245_v5 = vmul.f32 %v1539_v29, %v189_v1 }
  0xb1   :  { %v1590_v6 = vadd.f32 %v244_v28, %v1437_v42  ;;  %v1593_v7 = vadd.f32 %v245_v5, %v1441_v44 }
  0xb2   :  { %v191_v34 = vpop.permute.xlu0 %190  ;;  %v193_v8 = vpop.permute.xlu1 %192 }
  0xb3   :  { %v246_v36 = vmul.f32 %v1539_v29, %v191_v34  ;;  %314 = vrot.lane.b32.xlu1 %v1581_v63, %s1365_s6  ;;  %316 = vrot.lane.b32.xlu0 %v1590_v6, %s1365_s6  ;;  %v247_v9 = vmul.f32 %v1539_v29, %v193_v8 }
  0xb5   :  { %v1602_v14 = vadd.f32 %v246_v36, %v1445_v50  ;;  %v1605_v16 = vadd.f32 %v247_v9, %v1449_v52 }
  0xb6   :  { %v195_v42 = vpop.permute.xlu0 %194  ;;  %v197_v44 = vpop.permute.xlu1 %196 }
  0xb7   :  { %318 = vrot.lane.b32.xlu1 %v1593_v7, %s1365_s6  ;;  %320 = vrot.lane.b32.xlu0 %v1602_v14, %s1365_s6  ;;  %v248_v27 = vmul.f32 %v1539_v29, %v195_v42  ;;  %v249_v30 = vmul.f32 %v1539_v29, %v197_v44 }
  0xb9   :  { %v1614_v33 = vadd.f32 %v249_v30, %v1457_v60  ;;  %v1617_v50 = vadd.f32 %v248_v27, %v1453_v58 }
  0xba   :  { %v199_v31 = vpop.permute.xlu0 %198  ;;  %v201_v52 = vpop.permute.xlu1 %200 }
  0xbb   :  { %364 = vrot.lane.b32.xlu1 %v1536_v25, %s1365_s6  ;;  %322 = vrot.lane.b32.xlu0 %v1605_v16, %s1365_s6  ;;  %v250_v37 = vmul.f32 %v1539_v29, %v199_v31  ;;  %v251_v39 = vmul.f32 %v1539_v29, %v201_v52 }
  0xbd   :  { %v1626_v45 = vadd.f32 %v251_v39, %v1465_v4  ;;  %v1629_v60 = vadd.f32 %v250_v37, %v1461_v2 }
  0xbe   :  { %v203_v41 = vpop.permute.xlu0 %202  ;;  %v205_v58 = vpop.permute.xlu1 %204 }
  0xbf   :  { %326 = vrot.lane.b32.xlu0 %v1614_v33, %s1365_s6  ;;  %324 = vrot.lane.b32.xlu1 %v1617_v50, %s1365_s6  ;;  %v252_v47 = vmul.f32 %v1539_v29, %v203_v41  ;;  %v253_v49 = vmul.f32 %v1539_v29, %v205_v58 }
  0xc1   :  { %v1638_v17 = vadd.f32 %v253_v49, %v1473_v13  ;;  %v1641_v4 = vadd.f32 %v252_v47, %v1469_v10 }
  0xc2   :  { %v207_v51 = vpop.permute.xlu0 %206  ;;  %v209_v2 = vpop.permute.xlu1 %208 }
  0xc3   :  { %330 = vrot.lane.b32.xlu0 %v1626_v45, %s1365_s6  ;;  %328 = vrot.lane.b32.xlu1 %v1629_v60, %s1365_s6  ;;  %v254_v53 = vmul.f32 %v1539_v29, %v207_v51  ;;  %v255_v18 = vmul.f32 %v1539_v29, %v209_v2 }
  0xc5   :  { %v1650_v59 = vadd.f32 %v255_v18, %v1481_v24  ;;  %v1653_v13 = vadd.f32 %v254_v53, %v1477_v22 }
  0xc6   :  { %v211_v20 = vpop.permute.xlu0 %210  ;;  %v213_v10 = vpop.permute.xlu1 %212 }
  0xc7   :  { %334 = vrot.lane.b32.xlu0 %v1638_v17, %s1365_s6  ;;  %332 = vrot.lane.b32.xlu1 %v1641_v4, %s1365_s6  ;;  %v256_v61 = vmul.f32 %v1539_v29, %v211_v20  ;;  %v257_v26 = vmul.f32 %v1539_v29, %v213_v10 }
  0xc9   :  { %v1662_v1 = vadd.f32 %v257_v26, %v1489_v35  ;;  %v1665_v24 = vadd.f32 %v256_v61, %v1485_v32 }
  0xca   :  { %v215_v28 = vpop.permute.xlu0 %214  ;;  %v217_v22 = vpop.permute.xlu1 %216 }
  0xcb   :  { %338 = vrot.lane.b32.xlu0 %v1650_v59, %s1365_s6  ;;  %336 = vrot.lane.b32.xlu1 %v1653_v13, %s1365_s6  ;;  %v258_v5 = vmul.f32 %v1539_v29, %v215_v28  ;;  %v259_v34 = vmul.f32 %v1539_v29, %v217_v22 }
  0xcd   :  { %v1674_v8 = vadd.f32 %v259_v34, %v1497_v46  ;;  %v1677_v35 = vadd.f32 %v258_v5, %v1493_v43 }
  0xce   :  { %v219_v36 = vpop.permute.xlu0 %218  ;;  %v221_v32 = vpop.permute.xlu1 %220 }
  0xcf   :  { %342 = vrot.lane.b32.xlu0 %v1662_v1, %s1365_s6  ;;  %340 = vrot.lane.b32.xlu1 %v1665_v24, %s1365_s6  ;;  %v260_v9 = vmul.f32 %v1539_v29, %v219_v36  ;;  %v261_v42 = vmul.f32 %v1539_v29, %v221_v32 }
  0xd1   :  { %v1686_v27 = vadd.f32 %v261_v42, %v1505_v56  ;;  %v1689_v46 = vadd.f32 %v260_v9, %v1501_v54 }
  0xd2   :  { %v223_v44 = vpop.permute.xlu0 %222  ;;  %v225_v43 = vpop.permute.xlu1 %224 }
  0xd3   :  { %346 = vrot.lane.b32.xlu0 %v1674_v8, %s1365_s6  ;;  %344 = vrot.lane.b32.xlu1 %v1677_v35, %s1365_s6  ;;  %v262_v30 = vmul.f32 %v1539_v29, %v223_v44  ;;  %v263_v31 = vmul.f32 %v1539_v29, %v225_v43 }
  0xd5   :  { %v1698_v37 = vadd.f32 %v263_v31, %v1513_v3  ;;  %v1701_v56 = vadd.f32 %v262_v30, %v1509_v0  ;;  %v371_v31 = vand.u32 1, %v1536_v25 }
  0xd6   :  { %v227_v52 = vpop.permute.xlu0 %226  ;;  %v229_v54 = vpop.permute.xlu1 %228 }
  0xd7   :  { %350 = vrot.lane.b32.xlu0 %v1686_v27, %s1365_s6  ;;  %348 = vrot.lane.b32.xlu1 %v1689_v46, %s1365_s6  ;;  %v264_v39 = vmul.f32 %v1539_v29, %v227_v52  ;;  %v265_v41 = vmul.f32 %v1539_v29, %v229_v54 }
  0xd9   :  { %v1710_v47 = vadd.f32 %v265_v41, %v1521_v15  ;;  %v1713_v3 = vadd.f32 %v264_v39, %v1517_v11 }
  0xda   :  { %v231_v58 = vpop.permute.xlu0 %230  ;;  %v233_v0 = vpop.permute.xlu1 %232 }
  0xdb   :  { %354 = vrot.lane.b32.xlu0 %v1698_v37, %s1365_s6  ;;  %352 = vrot.lane.b32.xlu1 %v1701_v56, %s1365_s6  ;;  %v266_v49 = vmul.f32 %v1539_v29, %v231_v58  ;;  %v267_v51 = vmul.f32 %v1539_v29, %v233_v0  ;;  %v1764_v0 = vadd.s32 1, %v1536_v25 }
  0xdd   :  { %v1722_v2 = vadd.f32 %v267_v51, %v1529_v21  ;;  %v1725_v15 = vadd.f32 %v266_v49, %v1525_v19  ;;  %v1766_v49 = vmul.u32 2, %v371_v31 }
  0xdf   :  { %2663 = vst [vmem:[#allocation11_spill] sm:$0xff] %v1722_v2  ;;  %2664 = vst [vmem:[#allocation12_spill] sm:$0xff] %v1725_v15  ;;  %358 = vrot.lane.b32.xlu0 %v1710_v47, %s1365_s6  ;;  %356 = vrot.lane.b32.xlu1 %v1713_v3, %s1365_s6 }
  0xe3   :  { %362 = vrot.lane.b32.xlu0 %v1722_v2, %s1365_s6  ;;  %360 = vrot.lane.b32.xlu1 %v1725_v15, %s1365_s6 }
 0x115   :  { %v301_v11 = vpop.permute.xlu0 %300 }
 0x116   :  { %v382_v29 = vadd.f32 %v301_v11, %v1544_v38  ;;  %v414_v21 = vsub.f32 %v301_v11, %v1544_v38  ;;  %v1772_v11 = vshrl.u32 %v168_v23, 7 }
 0x118   :  { %v446_v20 = vmul.f32 %v382_v29, %v382_v29  ;;  %v734_v61 = vmul.f32 %v414_v21, %v414_v21 }
 0x119   :  { %v303_v53 = vpop.permute.xlu1 %302  ;;  %v305_v19 = vpop.permute.xlu0 %304 }
 0x11a   :  { %v383_v18 = vadd.f32 %v303_v53, %v1554_v48  ;;  %v415_v10 = vsub.f32 %v303_v53, %v1554_v48  ;;  %v384_v26 = vadd.f32 %v305_v19, %v1547_v40  ;;  %v416_v28 = vsub.f32 %v305_v19, %v1547_v40 }
 0x11b   :  { %v1741_v34 = vadd.f32 1e-06, %v446_v20  ;;  %v1743_v32 = vadd.f32 1e-06, %v734_v61 }
 0x11c   :  { %v447_v22 = vmul.f32 %v383_v18, %v383_v18  ;;  %v735_v36 = vmul.f32 %v415_v10, %v415_v10  ;;  %v448_v38 = vmul.f32 %v384_v26, %v384_v26  ;;  %v736_v9 = vmul.f32 %v416_v28, %v416_v28 }
 0x11d   :  { %v307_v5 = vpop.permute.xlu1 %306  ;;  %1159 = vrsqrt.f32 %v1741_v34  ;;  %v309_v30 = vpop.permute.xlu0 %308  ;;  %vm512_vm1 = vcmp.eq.f32.partialorder %v1741_v34, inf  ;;  %v515_v61 = vand.u32 2147483648, %v1741_v34  ;;  %vm800_vm2 = vcmp.eq.f32.partialorder %v1743_v32, inf }
 0x11e   :  { %v385_v42 = vadd.f32 %v307_v5, %v1557_v12  ;;  %v1746_v44 = vadd.f32 1e-06, %v447_v22  ;;  %v417_v48 = vsub.f32 %v307_v5, %v1557_v12  ;;  %v1750_v43 = vadd.f32 1e-06, %v735_v36 }
 0x11f   :  { %1161 = vrsqrt.f32 %v1743_v32  ;;  %v1753_v40 = vadd.f32 1e-06, %v448_v38  ;;  %v1756_v52 = vadd.f32 1e-06, %v736_v9  ;;  %v386_v12 = vadd.f32 %v309_v30, %v1566_v55 }
 0x120   :  { %v449_v54 = vmul.f32 %v385_v42, %v385_v42  ;;  %1163 = vrsqrt.f32 %v1746_v44  ;;  %v737_v39 = vmul.f32 %v417_v48, %v417_v48  ;;  %v418_v58 = vsub.f32 %v309_v30, %v1566_v55 }
 0x121   :  { %1165 = vrsqrt.f32 %v1750_v43  ;;  %v311_v41 = vpop.permute.xlu1 %310  ;;  %v450_v53 = vmul.f32 %v386_v12, %v386_v12  ;;  %v313_v18 = vpop.permute.xlu0 %312  ;;  %vm514_vm3 = vcmp.eq.f32.partialorder %v1741_v34, 0.0  ;;  %vm802_vm4 = vcmp.eq.f32.partialorder %v1743_v32, 0.0 }
 0x122   :  { %1167 = vrsqrt.f32 %v1753_v40  ;;  %v1769_v51 = vadd.f32 1e-06, %v449_v54  ;;  %v1774_v29 = vadd.f32 1e-06, %v737_v39  ;;  %v387_v21 = vadd.f32 %v311_v41, %v1569_v57 }
 0x123   :  { %1169 = vrsqrt.f32 %v1756_v52  ;;  %v419_v19 = vsub.f32 %v311_v41, %v1569_v57  ;;  %v738_v55 = vmul.f32 %v418_v58, %v418_v58  ;;  %v1788_v26 = vadd.f32 1e-06, %v450_v53 }
 0x124   :  { %1171 = vrsqrt.f32 %v1769_v51  ;;  %v451_v57 = vmul.f32 %v387_v21, %v387_v21  ;;  %v388_v22 = vadd.f32 %v313_v18, %v1578_v62  ;;  %v803_v38 = vand.u32 2147483648, %v1743_v32 }
 0x125   :  { %1173 = vrsqrt.f32 %v1774_v29  ;;  %v739_v28 = vmul.f32 %v419_v19, %v419_v19  ;;  %v1793_v9 = vadd.f32 1e-06, %v738_v55  ;;  %v420_v42 = vsub.f32 %v313_v18, %v1578_v62  ;;  %v315_v53 = vpop.permute.xlu1 %314 }
 0x126   :  { %vm519_vm5 = vcmp.eq.f32.partialorder %v1746_v44, inf  ;;  %v522_v31 = vand.u32 2147483648, %v1746_v44  ;;  %vm807_vm6 = vcmp.eq.f32.partialorder %v1750_v43, inf  ;;  %v810_v39 = vand.u32 2147483648, %v1750_v43 }
 0x127   :  { %v1160_v20 = vpop.eup %1159  ;;  %vm526_vm7 = vcmp.eq.f32.partialorder %v1753_v40, inf  ;;  %v529_v12 = vand.u32 2147483648, %v1753_v40  ;;  %v1803_v41 = vadd.f32 1e-06, %v451_v57  ;;  %vm521_vm8 = vcmp.eq.f32.partialorder %v1746_v44, 0.0 }
 0x128   :  { %v511_v36 = vmul.f32 %v1160_v20, %v1741_v34  ;;  %vm814_vm9 = vcmp.eq.f32.partialorder %v1756_v52, inf  ;;  %1175 = vrsqrt.f32 %v1788_v26  ;;  %v1808_v62 = vadd.f32 1e-06, %v739_v28 }
 0x129   :  { %v1162_v10 = vpop.eup %1161  ;;  %v452_v21 = vmul.f32 %v388_v22, %v388_v22  ;;  %vm809_vm10 = vcmp.eq.f32.partialorder %v1750_v43, 0.0  ;;  %vm528_vm11 = vcmp.eq.f32.partialorder %v1753_v40, 0.0  ;;  %vm816_vm12 = vcmp.eq.f32.partialorder %v1756_v52, 0.0 }
 0x12a   :  { %v1164_v5 = vpop.eup %1163  ;;  %v799_v30 = vmul.f32 %v1162_v10, %v1743_v32  ;;  %v513_v19 = vsel %vm512_vm1, %v1741_v34, %v511_v36  ;;  %v817_v55 = vand.u32 2147483648, %v1756_v52  ;;  %1177 = vrsqrt.f32 %v1793_v9 }
 0x12b   :  { %v1166_v48 = vpop.eup %1165  ;;  %v740_v18 = vmul.f32 %v420_v42, %v420_v42  ;;  %v518_v10 = vmul.f32 %v1164_v5, %v1746_v44  ;;  %vm533_vm13 = vcmp.eq.f32.partialorder %v1769_v51, inf  ;;  %1179 = vrsqrt.f32 %v1803_v41 }
 0x12c   :  { %v1168_v54 = vpop.eup %1167  ;;  %v801_v20 = vsel %vm800_vm2, %v1743_v32, %v799_v30  ;;  %v806_v57 = vmul.f32 %v1166_v48, %v1750_v43  ;;  %v389_v36 = vadd.f32 %v315_v53, %v1581_v63  ;;  %v536_v42 = vand.u32 2147483648, %v1769_v51  ;;  %v317_v48 = vpop.permute.xlu0 %316 }
 0x12d   :  { %v1170_v58 = vpop.eup %1169  ;;  %v525_v28 = vmul.f32 %v1168_v54, %v1753_v40  ;;  %vm821_vm14 = vcmp.eq.f32.partialorder %v1774_v29, inf  ;;  %1181 = vrsqrt.f32 %v1808_v62  ;;  %v1831_v5 = vadd.f32 1e-06, %v452_v21 }
 0x12e   :  { %v813_v22 = vmul.f32 %v1170_v58, %v1756_v52  ;;  %v1172_v23 = vpop.eup %1171  ;;  %v516_v54 = vsel %vm514_vm3, %v515_v61, %v513_v19  ;;  %v804_v58 = vsel %vm802_vm4, %v803_v38, %v801_v20  ;;  %vm535_vm15 = vcmp.eq.f32.partialorder %v1769_v51, 0.0 }
 0x12f   :  { %v1174_v30 = vpop.eup %1173  ;;  %v824_v25 = vand.u32 2147483648, %v1774_v29  ;;  %v1839_v2 = vadd.f32 1e-06, %v740_v18  ;;  %v520_v15 = vsel %vm519_vm5, %v1746_v44, %v518_v10  ;;  %v808_v21 = vsel %vm807_vm6, %v1750_v43, %v806_v57 }
 0x130   :  { %v527_v34 = vsel %vm526_vm7, %v1753_v40, %v525_v28  ;;  %vm823_vm0 = vcmp.eq.f32.partialorder %v1774_v29, 0.0  ;;  %v421_v32 = vsub.f32 %v315_v53, %v1581_v63  ;;  %v815_v61 = vsel %vm814_vm9, %v1756_v52, %v813_v22  ;;  %v319_v28 = vpop.permute.xlu1 %318 }
 0x131   :  { %v532_v38 = vmul.f32 %v1172_v23, %v1769_v51  ;;  %v453_v19 = vmul.f32 %v389_v36, %v389_v36  ;;  %v390_v18 = vadd.f32 %v317_v48, %v1590_v6  ;;  %v1857_v20 = vadd.f32 %v804_v58, %v516_v54 }
 0x132   :  { %v820_v10 = vmul.f32 %v1174_v30, %v1774_v29  ;;  %1183 = vrsqrt.f32 %v1831_v5  ;;  %v422_v57 = vsub.f32 %v317_v48, %v1590_v6  ;;  %v523_v63 = vsel %vm521_vm8, %v522_v31, %v520_v15  ;;  %v1176_v23 = vpop.eup %1175 }
 0x133   :  { %vm540_vm1 = vcmp.eq.f32.partialorder %v1788_v26, inf  ;;  %v543_v53 = vand.u32 2147483648, %v1788_v26  ;;  %vm828_vm2 = vcmp.eq.f32.partialorder %v1793_v9, inf  ;;  %1185 = vrsqrt.f32 %v1839_v2 }
 0x134   :  { %v811_v22 = vsel %vm809_vm10, %v810_v39, %v808_v21  ;;  %v530_v36 = vsel %vm528_vm11, %v529_v12, %v527_v34  ;;  %v818_v6 = vsel %vm816_vm12, %v817_v55, %v815_v61  ;;  %v741_v44 = vmul.f32 %v421_v32, %v421_v32  ;;  %v1178_v15 = vpop.eup %1177 }
 0x135   :  { %v534_v31 = vsel %vm533_vm13, %v1769_v51, %v532_v38  ;;  %v1877_v48 = vadd.f32 1e-06, %v453_v19  ;;  %v454_v30 = vmul.f32 %v390_v18, %v390_v18  ;;  %v391_v54 = vadd.f32 %v319_v28, %v1593_v7  ;;  %v1180_v12 = vpop.eup %1179 }
 0x136   :  { %v822_v43 = vsel %vm821_vm14, %v1774_v29, %v820_v10  ;;  %vm542_vm3 = vcmp.eq.f32.partialorder %v1788_v26, 0.0  ;;  %v831_v40 = vand.u32 2147483648, %v1793_v9  ;;  %v742_v52 = vmul.f32 %v422_v57, %v422_v57  ;;  %v321_v57 = vpop.permute.xlu0 %320 }
 0x137   :  { %v423_v39 = vsub.f32 %v319_v28, %v1593_v7  ;;  %v1886_v55 = vadd.f32 %v811_v22, %v523_v63  ;;  %v1888_v58 = vadd.f32 %v818_v6, %v530_v36  ;;  %vm830_vm4 = vcmp.eq.f32.partialorder %v1793_v9, 0.0  ;;  %v1182_v34 = vpop.eup %1181  ;;  %v365_v28 = vpop.permute.xlu1 %364 }
 0x138   :  { %vm547_vm5 = vcmp.eq.f32.partialorder %v1803_v41, inf  ;;  %v550_v21 = vand.u32 2147483648, %v1803_v41  ;;  %v537_v32 = vsel %vm535_vm15, %v536_v42, %v534_v31  ;;  %v539_v61 = vmul.f32 %v1176_v23, %v1788_v26 }
 0x139   :  { %v827_v38 = vmul.f32 %v1178_v15, %v1793_v9  ;;  %v1897_v7 = vadd.f32 1e-06, %v741_v44  ;;  %v825_v19 = vsel %vm823_vm0, %v824_v25, %v822_v43  ;;  %vm549_vm6 = vcmp.eq.f32.partialorder %v1803_v41, 0.0 }
 0x13a   :  { %1187 = vrsqrt.f32 %v1877_v48  ;;  %v1903_v18 = vadd.f32 1e-06, %v454_v30  ;;  %v455_v10 = vmul.f32 %v391_v54, %v391_v54  ;;  %vm835_vm7 = vcmp.eq.f32.partialorder %v1808_v62, inf }
 0x13b   :  { %vm837_vm8 = vcmp.eq.f32.partialorder %v1808_v62, 0.0  ;;  %v1907_v51 = vadd.f32 1e-06, %v742_v52  ;;  %v743_v42 = vmul.f32 %v423_v39, %v423_v39  ;;  %v546_v63 = vmul.f32 %v1180_v12, %v1803_v41 }
 0x13c   :  { %v834_v29 = vmul.f32 %v1182_v34, %v1808_v62  ;;  %v838_v25 = vand.u32 2147483648, %v1808_v62  ;;  %vm554_vm9 = vcmp.eq.f32.partialorder %v1831_v5, inf  ;;  %v1184_v23 = vpop.eup %1183  ;;  %v1913_v22 = vadd.f32 %v825_v19, %v537_v32  ;;  %v323_v19 = vpop.permute.xlu0 %322 }
 0x13d   :  { %v541_v36 = vsel %vm540_vm1, %v1788_v26, %v539_v61  ;;  %v829_v6 = vsel %vm828_vm2, %v1793_v9, %v827_v38  ;;  %1189 = vrsqrt.f32 %v1897_v7  ;;  %v1186_v44 = vpop.eup %1185  ;;  %v1923_v15 = vadd.f32 1e-06, %v455_v10 }
 0x13e   :  { %1191 = vrsqrt.f32 %v1903_v18  ;;  %v392_v31 = vadd.f32 %v321_v57, %v1602_v14  ;;  %v2665_v30 = vsub.s32 %v1764_v0, %v1766_v49  ;;  %vm556_vm11 = vcmp.eq.f32.partialorder %v1831_v5, 0.0 }
 0x13f   :  { %v557_v54 = vand.u32 2147483648, %v1831_v5  ;;  %1193 = vrsqrt.f32 %v1907_v51  ;;  %v1932_v43 = vadd.f32 1e-06, %v743_v42  ;;  %v424_v52 = vsub.f32 %v321_v57, %v1602_v14 }
 0x140   :  { %vm381_vm10 = vcmp.eq.s32.totalorder %v365_v28, %v2665_v30  ;;  %v544_v39 = vsel %vm542_vm3, %v543_v53, %v541_v36  ;;  %v548_v12 = vsel %vm547_vm5, %v1803_v41, %v546_v63  ;;  %v836_v0 = vsel %vm835_vm7, %v1808_v62, %v834_v29  ;;  %v325_v36 = vpop.permute.xlu1 %324 }
 0x141   :  { %vm842_vm12 = vcmp.eq.f32.partialorder %v1839_v2, inf  ;;  %v832_v49 = vsel %vm830_vm4, %v831_v40, %v829_v6  ;;  %v553_v34 = vmul.f32 %v1184_v23, %v1831_v5  ;;  %v841_v14 = vmul.f32 %v1186_v44, %v1839_v2 }
 0x142   :  { %v1366_v32 = vmov 0   ;;  %vm844_vm13 = vcmp.eq.f32.partialorder %v1839_v2, 0.0  ;;  %1195 = vrsqrt.f32 %v1923_v15  ;;  %v456_v53 = vmul.f32 %v392_v31, %v392_v31 }
 0x143   :  { %v1054_v26 = vsel %vm381_vm10, 1, %v1366_v32  ;;  %v2666_v61 = vsub.s32 0, %v1772_v11  ;;  %v551_v9 = vsel %vm549_vm6, %v550_v21, %v548_v12  ;;  %v839_v40 = vsel %vm837_vm8, %v838_v25, %v836_v0 }
 0x144   :  { %1197 = vrsqrt.f32 %v1932_v43  ;;  %v744_v10 = vmul.f32 %v424_v52, %v424_v52  ;;  %v1188_v42 = vpop.eup %1187  ;;  %v1959_v57 = vadd.f32 %v832_v49, %v544_v39  ;;  %v845_v28 = vand.u32 2147483648, %v1839_v2 }
 0x145   :  { %v1952_v38 = vrot.slane %v1054_v26, %v2666_v61  ;;  %vm561_vm14 = vcmp.eq.f32.partialorder %v1877_v48, inf  ;;  %v564_v63 = vand.u32 2147483648, %v1877_v48  ;;  %v555_v41 = vsel %vm554_vm9, %v1831_v5, %v553_v34 }
 0x146   :  { %v843_v62 = vsel %vm842_vm12, %v1839_v2, %v841_v14  ;;  %vm563_vm15 = vcmp.eq.f32.partialorder %v1877_v48, 0.0  ;;  %vm849_vm0 = vcmp.eq.f32.partialorder %v1897_v7, inf  ;;  %v852_v21 = vand.u32 2147483648, %v1897_v7 }
 0x147   :  { %v393_v29 = vadd.f32 %v323_v19, %v1605_v16  ;;  %v1974_v25 = vadd.f32 %v839_v40, %v551_v9  ;;  %vm568_vm1 = vcmp.eq.f32.partialorder %v1903_v18, inf  ;;  %v1977_v23 = vadd.f32 1e-06, %v456_v53  ;;  %v1190_v6 = vpop.eup %1189 }
 0x148   :  { %vm1059_vm2 = vcmp.eq.s32.totalorder %v1952_v38, 1  ;;  %v560_v44 = vmul.f32 %v1188_v42, %v1877_v48  ;;  %v571_v31 = vand.u32 2147483648, %v1903_v18  ;;  %vm856_vm3 = vcmp.eq.f32.partialorder %v1907_v51, inf  ;;  %v1192_v52 = vpop.eup %1191 }
 0x149   :  { %v1983_v30 = vadd.f32 1e-06, %v744_v10  ;;  %v558_v39 = vsel %vm556_vm11, %v557_v54, %v555_v41  ;;  %v846_v12 = vsel %vm844_vm13, %v845_v28, %v843_v62  ;;  %v859_v0 = vand.u32 2147483648, %v1907_v51  ;;  %v1194_v34 = vpop.eup %1193 }
 0x14a   :  { %v425_v49 = vsub.f32 %v323_v19, %v1605_v16  ;;  %vm851_vm4 = vcmp.eq.f32.partialorder %v1897_v7, 0.0  ;;  %vm570_vm5 = vcmp.eq.f32.partialorder %v1903_v18, 0.0  ;;  %v1060_v14 = vsel %vm1059_vm2, %v1857_v20, 0.0 }
 0x14b   :  { %v1061_v5 = vsel %vm1059_vm2, %v1886_v55, 0.0  ;;  %v457_v54 = vmul.f32 %v393_v29, %v393_v29  ;;  %v394_v2 = vadd.f32 %v325_v36, %v1617_v50  ;;  %v848_v32 = vmul.f32 %v1190_v6, %v1897_v7  ;;  %v327_v6 = vpop.permute.xlu0 %326 }
 0x14c   :  { %vm858_vm6 = vcmp.eq.f32.partialorder %v1907_v51, 0.0  ;;  %vm575_vm7 = vcmp.eq.f32.partialorder %v1923_v15, inf  ;;  %1199 = vrsqrt.f32 %v1977_v23  ;;  %v426_v16 = vsub.f32 %v325_v36, %v1617_v50  ;;  %v1196_v53 = vpop.eup %1195 }
 0x14d   :  { %v562_v20 = vsel %vm561_vm14, %v1877_v48, %v560_v44  ;;  %v567_v26 = vmul.f32 %v1192_v52, %v1903_v18  ;;  %v578_v55 = vand.u32 2147483648, %v1923_v15  ;;  %1201 = vrsqrt.f32 %v1983_v30 }
 0x14e   :  { %v1028_v61 = vadd.f32 %v846_v12, %v558_v39  ;;  %v855_v19 = vmul.f32 %v1194_v34, %v1907_v51  ;;  %vm863_vm8 = vcmp.eq.f32.partialorder %v1932_v43, inf  ;;  %v1092_v9 = vadd.f32 %v1061_v5, %v1060_v14  ;;  %v1198_v40 = vpop.eup %1197 }
 0x14f   :  { %vm577_vm9 = vcmp.eq.f32.partialorder %v1923_v15, 0.0  ;;  %v1062_v50 = vsel %vm1059_vm2, %v1888_v58, 0.0  ;;  %v2017_v10 = vadd.f32 1e-06, %v457_v54  ;;  %v745_v42 = vmul.f32 %v425_v49, %v425_v49 }
 0x150   :  { %v458_v28 = vmul.f32 %v394_v2, %v394_v2  ;;  %v565_v41 = vsel %vm563_vm15, %v564_v63, %v562_v20  ;;  %v850_v62 = vsel %vm849_vm0, %v1897_v7, %v848_v32  ;;  %vm865_vm10 = vcmp.eq.f32.partialorder %v1932_v43, 0.0 }
 0x151   :  { %v1093_v29 = vadd.f32 %v1092_v9, %v1062_v50  ;;  %v746_v36 = vmul.f32 %v426_v16, %v426_v16  ;;  %v569_v58 = vsel %vm568_vm1, %v1903_v18, %v567_v26  ;;  %v574_v44 = vmul.f32 %v1196_v53, %v1923_v15 }
 0x152   :  { %v1063_v48 = vsel %vm1059_vm2, %v1913_v22, 0.0  ;;  %1203 = vrsqrt.f32 %v2017_v10  ;;  %v857_v63 = vsel %vm856_vm3, %v1907_v51, %v855_v19  ;;  %v862_v52 = vmul.f32 %v1198_v40, %v1932_v43  ;;  %v329_v51 = vpop.permute.xlu1 %328 }
 0x153   :  { %v1094_v39 = vadd.f32 %v1093_v29, %v1063_v48  ;;  %v2037_v12 = vadd.f32 1e-06, %v745_v42  ;;  %v1064_v49 = vsel %vm1059_vm2, %v1959_v57, 0.0  ;;  %v2042_v34 = vadd.f32 1e-06, %v458_v28 }
 0x154   :  { %v2044_v14 = vadd.f32 1e-06, %v746_v36  ;;  %v395_v22 = vadd.f32 %v327_v6, %v1614_v33  ;;  %v853_v5 = vsel %vm851_vm4, %v852_v21, %v850_v62  ;;  %v572_v54 = vsel %vm570_vm5, %v571_v31, %v569_v58  ;;  %v331_v36 = vpop.permute.xlu0 %330 }
 0x155   :  { %v1095_v2 = vadd.f32 %v1094_v39, %v1064_v49  ;;  %1205 = vrsqrt.f32 %v2037_v12  ;;  %v860_v57 = vsel %vm858_vm6, %v859_v0, %v857_v63  ;;  %v576_v32 = vsel %vm575_vm7, %v1923_v15, %v574_v44 }
 0x156   :  { %v1065_v16 = vsel %vm1059_vm2, %v1974_v25, 0.0  ;;  %v427_v7 = vsub.f32 %v327_v6, %v1614_v33  ;;  %v1200_v21 = vpop.eup %1199  ;;  %v864_v18 = vsel %vm863_vm8, %v1932_v43, %v862_v52  ;;  %v866_v31 = vand.u32 2147483648, %v1932_v43 }
 0x157   :  { %v1096_v20 = vadd.f32 %v1095_v2, %v1065_v16  ;;  %1207 = vrsqrt.f32 %v2042_v34  ;;  %v1202_v0 = vpop.eup %1201  ;;  %v1029_v26 = vadd.f32 %v853_v5, %v565_v41  ;;  %vm582_vm11 = vcmp.eq.f32.partialorder %v1977_v23, inf }
 0x158   :  { %1209 = vrsqrt.f32 %v2044_v14  ;;  %v459_v25 = vmul.f32 %v395_v22, %v395_v22  ;;  %v1030_v53 = vadd.f32 %v860_v57, %v572_v54  ;;  %v579_v33 = vsel %vm577_vm9, %v578_v55, %v576_v32 }
 0x159   :  { %vm584_vm12 = vcmp.eq.f32.partialorder %v1977_v23, 0.0  ;;  %v585_v19 = vand.u32 2147483648, %v1977_v23  ;;  %v1066_v9 = vsel %vm1059_vm2, %v1028_v61, 0.0  ;;  %v867_v40 = vsel %vm865_vm10, %v866_v31, %v864_v18 }
 0x15a   :  { %v1097_v50 = vadd.f32 %v1096_v20, %v1066_v9  ;;  %v747_v42 = vmul.f32 %v427_v7, %v427_v7  ;;  %v396_v28 = vadd.f32 %v329_v51, %v1629_v60  ;;  %v581_v41 = vmul.f32 %v1200_v21, %v1977_v23 }
 0x15b   :  { %v869_v62 = vmul.f32 %v1202_v0, %v1983_v30  ;;  %vm870_vm13 = vcmp.eq.f32.partialorder %v1983_v30, inf  ;;  %v428_v15 = vsub.f32 %v329_v51, %v1629_v60  ;;  %vm872_vm14 = vcmp.eq.f32.partialorder %v1983_v30, 0.0 }
 0x15c   :  { %v1204_v55 = vpop.eup %1203  ;;  %v873_v61 = vand.u32 2147483648, %v1983_v30  ;;  %v1067_v43 = vsel %vm1059_vm2, %v1029_v26, 0.0  ;;  %v2087_v29 = vadd.f32 1e-06, %v459_v25  ;;  %v1031_v6 = vadd.f32 %v867_v40, %v579_v33 }
 0x15d   :  { %v1068_v58 = vsel %vm1059_vm2, %v1030_v53, 0.0  ;;  %v2091_v44 = vadd.f32 1e-06, %v747_v42  ;;  %v460_v48 = vmul.f32 %v396_v28, %v396_v28  ;;  %v1098_v63 = vadd.f32 %v1097_v50, %v1067_v43 }
 0x15e   :  { %vm589_vm15 = vcmp.eq.f32.partialorder %v2017_v10, inf  ;;  %vm591_vm0 = vcmp.eq.f32.partialorder %v2017_v10, 0.0  ;;  %v748_v60 = vmul.f32 %v428_v15, %v428_v15  ;;  %v583_v39 = vsel %vm582_vm11, %v1977_v23, %v581_v41 }
 0x15f   :  { %v1206_v52 = vpop.eup %1205  ;;  %v871_v49 = vsel %vm870_vm13, %v1983_v30, %v869_v62  ;;  %v588_v22 = vmul.f32 %v1204_v55, %v2017_v10  ;;  %v397_v5 = vadd.f32 %v331_v36, %v1626_v45  ;;  %v592_v54 = vand.u32 2147483648, %v2017_v10 }
 0x160   :  { %v876_v2 = vmul.f32 %v1206_v52, %v2037_v12  ;;  %1211 = vrsqrt.f32 %v2087_v29  ;;  %v429_v57 = vsub.f32 %v331_v36, %v1626_v45  ;;  %v1069_v16 = vsel %vm1059_vm2, %v1031_v6, 0.0  ;;  %v333_v45 = vpop.permute.xlu1 %332  ;;  %v335_v36 = vpop.permute.xlu0 %334 }
 0x161   :  { %v1208_v32 = vpop.eup %1207  ;;  %1213 = vrsqrt.f32 %v2091_v44  ;;  %v2110_v7 = vadd.f32 1e-06, %v460_v48  ;;  %v2112_v21 = vadd.f32 1e-06, %v748_v60  ;;  %v586_v31 = vsel %vm584_vm12, %v585_v19, %v583_v39 }
 0x162   :  { %v1210_v18 = vpop.eup %1209  ;;  %v874_v20 = vsel %vm872_vm14, %v873_v61, %v871_v49  ;;  %v1099_v51 = vadd.f32 %v1098_v63, %v1068_v58  ;;  %vm877_vm1 = vcmp.eq.f32.partialorder %v2037_v12, inf  ;;  %v590_v0 = vsel %vm589_vm15, %v2017_v10, %v588_v22 }
 0x163   :  { %v878_v26 = vsel %vm877_vm1, %v2037_v12, %v876_v2  ;;  %v880_v25 = vand.u32 2147483648, %v2037_v12  ;;  %v461_v53 = vmul.f32 %v397_v5, %v397_v5  ;;  %v595_v33 = vmul.f32 %v1208_v32, %v2042_v34 }
 0x164   :  { %v883_v23 = vmul.f32 %v1210_v18, %v2044_v14  ;;  %1215 = vrsqrt.f32 %v2110_v7  ;;  %v749_v30 = vmul.f32 %v429_v57, %v429_v57  ;;  %v1032_v19 = vadd.f32 %v874_v20, %v586_v31  ;;  %v337_v31 = vpop.permute.xlu1 %336 }
 0x165   :  { %1217 = vrsqrt.f32 %v2112_v21  ;;  %v398_v9 = vadd.f32 %v333_v45, %v1641_v4  ;;  %v430_v40 = vsub.f32 %v333_v45, %v1641_v4  ;;  %v1100_v50 = vadd.f32 %v1099_v51, %v1069_v16 }
 0x166   :  { %vm879_vm3 = vcmp.eq.f32.partialorder %v2037_v12, 0.0  ;;  %vm596_vm4 = vcmp.eq.f32.partialorder %v2042_v34, inf  ;;  %vm598_vm5 = vcmp.eq.f32.partialorder %v2042_v34, 0.0  ;;  %v593_v42 = vsel %vm591_vm0, %v592_v54, %v590_v0 }
 0x167   :  { %v881_v28 = vsel %vm879_vm3, %v880_v25, %v878_v26  ;;  %vm884_vm6 = vcmp.eq.f32.partialorder %v2044_v14, inf  ;;  %v2136_v41 = vadd.f32 1e-06, %v461_v53  ;;  %v597_v62 = vsel %vm596_vm4, %v2042_v34, %v595_v33 }
 0x168   :  { %v599_v15 = vand.u32 2147483648, %v2042_v34  ;;  %v885_v4 = vsel %vm884_vm6, %v2044_v14, %v883_v23  ;;  %v2141_v55 = vadd.f32 1e-06, %v749_v30  ;;  %v1070_v12 = vsel %vm1059_vm2, %v1032_v19, 0.0 }
 0x169   :  { %v887_v61 = vand.u32 2147483648, %v2044_v14  ;;  %v462_v10 = vmul.f32 %v398_v9, %v398_v9  ;;  %v750_v43 = vmul.f32 %v430_v40, %v430_v40  ;;  %v1101_v58 = vadd.f32 %v1100_v50, %v1070_v12  ;;  %v339_v50 = vpop.permute.xlu0 %338 }
 0x16a   :  { %v1212_v6 = vpop.eup %1211  ;;  %v1033_v48 = vadd.f32 %v881_v28, %v593_v42  ;;  %vm886_vm7 = vcmp.eq.f32.partialorder %v2044_v14, 0.0  ;;  %vm603_vm8 = vcmp.eq.f32.partialorder %v2087_v29, inf  ;;  %v600_v60 = vsel %vm598_vm5, %v599_v15, %v597_v62 }
 0x16b   :  { %v1214_v63 = vpop.eup %1213  ;;  %v888_v52 = vsel %vm886_vm7, %v887_v61, %v885_v4  ;;  %1219 = vrsqrt.f32 %v2136_v41  ;;  %v2151_v39 = vadd.f32 1e-06, %v462_v10  ;;  %v2154_v49 = vadd.f32 1e-06, %v750_v43 }
 0x16c   :  { %1221 = vrsqrt.f32 %v2141_v55  ;;  %v399_v22 = vadd.f32 %v335_v36, %v1638_v17  ;;  %v431_v5 = vsub.f32 %v335_v36, %v1638_v17  ;;  %v602_v14 = vmul.f32 %v1212_v6, %v2087_v29 }
 0x16d   :  { %vm605_vm9 = vcmp.eq.f32.partialorder %v2087_v29, 0.0  ;;  %v606_v34 = vand.u32 2147483648, %v2087_v29  ;;  %1223 = vrsqrt.f32 %v2151_v39  ;;  %v890_v2 = vmul.f32 %v1214_v63, %v2091_v44 }
 0x16e   :  { %v1216_v54 = vpop.eup %1215  ;;  %vm891_vm10 = vcmp.eq.f32.partialorder %v2091_v44, inf  ;;  %vm893_vm11 = vcmp.eq.f32.partialorder %v2091_v44, 0.0  ;;  %1225 = vrsqrt.f32 %v2154_v49  ;;  %v1071_v17 = vsel %vm1059_vm2, %v1033_v48, 0.0 }
 0x16f   :  { %v1218_v57 = vpop.eup %1217  ;;  %v1034_v32 = vadd.f32 %v888_v52, %v600_v60  ;;  %v894_v16 = vand.u32 2147483648, %v2091_v44  ;;  %v463_v18 = vmul.f32 %v399_v22, %v399_v22  ;;  %v1102_v20 = vadd.f32 %v1101_v58, %v1071_v17 }
 0x170   :  { %vm610_vm12 = vcmp.eq.f32.partialorder %v2110_v7, inf  ;;  %vm612_vm13 = vcmp.eq.f32.partialorder %v2110_v7, 0.0  ;;  %v751_v51 = vmul.f32 %v431_v5, %v431_v5  ;;  %v604_v45 = vsel %vm603_vm8, %v2087_v29, %v602_v14 }
 0x171   :  { %v609_v0 = vmul.f32 %v1216_v54, %v2110_v7  ;;  %v897_v26 = vmul.f32 %v1218_v57, %v2112_v21  ;;  %v2176_v25 = vadd.f32 1e-06, %v463_v18  ;;  %v892_v53 = vsel %vm891_vm10, %v2091_v44, %v890_v2  ;;  %v341_v57 = vpop.permute.xlu1 %340 }
 0x172   :  { %v2181_v33 = vadd.f32 1e-06, %v751_v51  ;;  %v400_v23 = vadd.f32 %v337_v31, %v1653_v13  ;;  %v432_v30 = vsub.f32 %v337_v31, %v1653_v13  ;;  %v1072_v19 = vsel %vm1059_vm2, %v1034_v32, 0.0 }
 0x173   :  { %v613_v9 = vand.u32 2147483648, %v2110_v7  ;;  %vm898_vm14 = vcmp.eq.f32.partialorder %v2112_v21, inf  ;;  %1227 = vrsqrt.f32 %v2176_v25  ;;  %vm900_vm15 = vcmp.eq.f32.partialorder %v2112_v21, 0.0 }
 0x174   :  { %v901_v40 = vand.u32 2147483648, %v2112_v21  ;;  %vm617_vm0 = vcmp.eq.f32.partialorder %v2136_v41, inf  ;;  %1229 = vrsqrt.f32 %v2181_v33  ;;  %v607_v13 = vsel %vm605_vm9, %v606_v34, %v604_v45 }
 0x175   :  { %v1220_v42 = vpop.eup %1219  ;;  %v895_v28 = vsel %vm893_vm11, %v894_v16, %v892_v53  ;;  %v611_v62 = vsel %vm610_vm12, %v2110_v7, %v609_v0  ;;  %v899_v15 = vsel %vm898_vm14, %v2112_v21, %v897_v26  ;;  %v1103_v12 = vadd.f32 %v1102_v20, %v1072_v19 }
 0x176   :  { %v1222_v4 = vpop.eup %1221  ;;  %v620_v61 = vand.u32 2147483648, %v2136_v41  ;;  %v464_v10 = vmul.f32 %v400_v23, %v400_v23  ;;  %v752_v43 = vmul.f32 %v432_v30, %v432_v30  ;;  %vm619_vm1 = vcmp.eq.f32.partialorder %v2136_v41, 0.0 }
 0x177   :  { %v1224_v36 = vpop.eup %1223  ;;  %vm905_vm3 = vcmp.eq.f32.partialorder %v2141_v55, inf  ;;  %vm907_vm4 = vcmp.eq.f32.partialorder %v2141_v55, 0.0  ;;  %v401_v29 = vadd.f32 %v339_v50, %v1650_v59  ;;  %v433_v44 = vsub.f32 %v339_v50, %v1650_v59 }
 0x178   :  { %v1226_v6 = vpop.eup %1225  ;;  %v1035_v58 = vadd.f32 %v895_v28, %v607_v13  ;;  %v614_v48 = vsel %vm612_vm13, %v613_v9, %v611_v62  ;;  %v902_v63 = vsel %vm900_vm15, %v901_v40, %v899_v15  ;;  %v2212_v60 = vadd.f32 1e-06, %v464_v10  ;;  %v343_v13 = vpop.permute.xlu0 %342 }
 0x179   :  { %v616_v52 = vmul.f32 %v1220_v42, %v2136_v41  ;;  %v904_v22 = vmul.f32 %v1222_v4, %v2141_v55  ;;  %v908_v5 = vand.u32 2147483648, %v2141_v55  ;;  %v2217_v14 = vadd.f32 1e-06, %v752_v43 }
 0x17a   :  { %v623_v59 = vmul.f32 %v1224_v36, %v2151_v39  ;;  %vm624_vm5 = vcmp.eq.f32.partialorder %v2151_v39, inf  ;;  %v911_v7 = vmul.f32 %v1226_v6, %v2154_v49  ;;  %v465_v34 = vmul.f32 %v401_v29, %v401_v29 }
 0x17b   :  { %v1036_v54 = vadd.f32 %v902_v63, %v614_v48  ;;  %vm626_vm6 = vcmp.eq.f32.partialorder %v2151_v39, 0.0  ;;  %v627_v21 = vand.u32 2147483648, %v2151_v39  ;;  %v753_v2 = vmul.f32 %v433_v44, %v433_v44 }
 0x17c   :  { %v1073_v17 = vsel %vm1059_vm2, %v1035_v58, 0.0  ;;  %vm912_vm7 = vcmp.eq.f32.partialorder %v2154_v49, inf  ;;  %vm914_vm8 = vcmp.eq.f32.partialorder %v2154_v49, 0.0  ;;  %1231 = vrsqrt.f32 %v2212_v60 }
 0x17d   :  { %v1228_v32 = vpop.eup %1227  ;;  %v1104_v16 = vadd.f32 %v1103_v12, %v1073_v17  ;;  %v618_v18 = vsel %vm617_vm0, %v2136_v41, %v616_v52  ;;  %v906_v31 = vsel %vm905_vm3, %v2141_v55, %v904_v22  ;;  %1233 = vrsqrt.f32 %v2217_v14  ;;  %v345_v55 = vpop.permute.xlu1 %344 }
 0x17e   :  { %v1230_v20 = vpop.eup %1229  ;;  %v625_v51 = vsel %vm624_vm5, %v2151_v39, %v623_v59  ;;  %v913_v45 = vsel %vm912_vm7, %v2154_v49, %v911_v7  ;;  %v2240_v0 = vadd.f32 1e-06, %v465_v34  ;;  %v402_v26 = vadd.f32 %v341_v57, %v1665_v24 }
 0x17f   :  { %v1074_v53 = vsel %vm1059_vm2, %v1036_v54, 0.0  ;;  %v915_v23 = vand.u32 2147483648, %v2154_v49  ;;  %v2246_v30 = vadd.f32 1e-06, %v753_v2  ;;  %v434_v19 = vsub.f32 %v341_v57, %v1665_v24 }
 0x180   :  { %v621_v9 = vsel %vm619_vm1, %v620_v61, %v618_v18  ;;  %v909_v40 = vsel %vm907_vm4, %v908_v5, %v906_v31  ;;  %v630_v50 = vmul.f32 %v1228_v32, %v2176_v25  ;;  %v918_v42 = vmul.f32 %v1230_v20, %v2181_v33 }
 0x181   :  { %v628_v28 = vsel %vm626_vm6, %v627_v21, %v625_v51  ;;  %v916_v62 = vsel %vm914_vm8, %v915_v23, %v913_v45  ;;  %vm631_vm9 = vcmp.eq.f32.partialorder %v2176_v25, inf  ;;  %vm633_vm10 = vcmp.eq.f32.partialorder %v2176_v25, 0.0 }
 0x182   :  { %v1105_v24 = vadd.f32 %v1104_v16, %v1074_v53  ;;  %vm919_vm11 = vcmp.eq.f32.partialorder %v2181_v33, inf  ;;  %1235 = vrsqrt.f32 %v2240_v0  ;;  %v466_v41 = vmul.f32 %v402_v26, %v402_v26 }
 0x183   :  { %v1037_v15 = vadd.f32 %v909_v40, %v621_v9  ;;  %1237 = vrsqrt.f32 %v2246_v30  ;;  %v754_v4 = vmul.f32 %v434_v19, %v434_v19  ;;  %v403_v39 = vadd.f32 %v343_v13, %v1662_v1 }
 0x184   :  { %v1038_v12 = vadd.f32 %v916_v62, %v628_v28  ;;  %v632_v49 = vsel %vm631_vm9, %v2176_v25, %v630_v50  ;;  %v920_v61 = vsel %vm919_vm11, %v2181_v33, %v918_v42  ;;  %v2267_v10 = vadd.f32 1e-06, %v466_v41 }
 0x185   :  { %v2269_v43 = vadd.f32 1e-06, %v754_v4  ;;  %v435_v36 = vsub.f32 %v343_v13, %v1662_v1  ;;  %v467_v29 = vmul.f32 %v403_v39, %v403_v39  ;;  %v404_v44 = vadd.f32 %v345_v55, %v1677_v35 }
 0x186   :  { %v1232_v6 = vpop.eup %1231  ;;  %v634_v58 = vand.u32 2147483648, %v2176_v25  ;;  %v922_v48 = vand.u32 2147483648, %v2181_v33  ;;  %1239 = vrsqrt.f32 %v2267_v10  ;;  %v436_v63 = vsub.f32 %v345_v55, %v1677_v35  ;;  %v347_v25 = vpop.permute.xlu0 %346 }
 0x187   :  { %v1234_v52 = vpop.eup %1233  ;;  %v1075_v22 = vsel %vm1059_vm2, %v1037_v15, 0.0  ;;  %vm921_vm12 = vcmp.eq.f32.partialorder %v2181_v33, 0.0  ;;  %vm638_vm13 = vcmp.eq.f32.partialorder %v2212_v60, inf  ;;  %1241 = vrsqrt.f32 %v2269_v43 }
 0x188   :  { %v1106_v1 = vadd.f32 %v1105_v24, %v1075_v22  ;;  %v635_v5 = vsel %vm633_vm10, %v634_v58, %v632_v49  ;;  %v923_v59 = vsel %vm921_vm12, %v922_v48, %v920_v61  ;;  %vm640_vm14 = vcmp.eq.f32.partialorder %v2212_v60, 0.0  ;;  %v349_v24 = vpop.permute.xlu1 %348 }
 0x189   :  { %v1076_v35 = vsel %vm1059_vm2, %v1038_v12, 0.0  ;;  %v2287_v7 = vadd.f32 1e-06, %v467_v29  ;;  %v755_v34 = vmul.f32 %v435_v36, %v435_v36  ;;  %v468_v54 = vmul.f32 %v404_v44, %v404_v44 }
 0x18a   :  { %v637_v33 = vmul.f32 %v1232_v6, %v2212_v60  ;;  %v641_v21 = vand.u32 2147483648, %v2212_v60  ;;  %v925_v2 = vmul.f32 %v1234_v52, %v2217_v14  ;;  %v756_v57 = vmul.f32 %v436_v63, %v436_v63  ;;  %v351_v44 = vpop.permute.xlu0 %350 }
 0x18b   :  { %v1039_v17 = vadd.f32 %v923_v59, %v635_v5  ;;  %vm926_vm15 = vcmp.eq.f32.partialorder %v2217_v14, inf  ;;  %vm928_vm0 = vcmp.eq.f32.partialorder %v2217_v14, 0.0  ;;  %1243 = vrsqrt.f32 %v2287_v7 }
 0x18c   :  { %v1236_v32 = vpop.eup %1235  ;;  %v1107_v16 = vadd.f32 %v1106_v1, %v1076_v35  ;;  %v929_v18 = vand.u32 2147483648, %v2217_v14  ;;  %vm645_vm1 = vcmp.eq.f32.partialorder %v2240_v0, inf  ;;  %v2297_v31 = vadd.f32 1e-06, %v755_v34 }
 0x18d   :  { %v1238_v20 = vpop.eup %1237  ;;  %v648_v51 = vand.u32 2147483648, %v2240_v0  ;;  %vm933_vm3 = vcmp.eq.f32.partialorder %v2246_v30, inf  ;;  %v2301_v45 = vadd.f32 1e-06, %v468_v54  ;;  %v2303_v26 = vadd.f32 1e-06, %v756_v57 }
 0x18e   :  { %v639_v53 = vsel %vm638_vm13, %v2212_v60, %v637_v33  ;;  %v927_v23 = vsel %vm926_vm15, %v2217_v14, %v925_v2  ;;  %vm647_vm4 = vcmp.eq.f32.partialorder %v2240_v0, 0.0  ;;  %1245 = vrsqrt.f32 %v2297_v31 }
 0x18f   :  { %v405_v19 = vadd.f32 %v347_v25, %v1674_v8  ;;  %v1077_v9 = vsel %vm1059_vm2, %v1039_v17, 0.0  ;;  %vm935_vm5 = vcmp.eq.f32.partialorder %v2246_v30, 0.0  ;;  %v936_v40 = vand.u32 2147483648, %v2246_v30 }
 0x190   :  { %v437_v50 = vsub.f32 %v347_v25, %v1674_v8  ;;  %v1240_v42 = vpop.eup %1239  ;;  %v1108_v13 = vadd.f32 %v1107_v16, %v1077_v9  ;;  %v644_v28 = vmul.f32 %v1236_v32, %v2240_v0  ;;  %v932_v62 = vmul.f32 %v1238_v20, %v2246_v30 }
 0x191   :  { %1247 = vrsqrt.f32 %v2301_v45  ;;  %v1242_v41 = vpop.eup %1241  ;;  %v642_v55 = vsel %vm640_vm14, %v641_v21, %v639_v53  ;;  %v930_v15 = vsel %vm928_vm0, %v929_v18, %v927_v23  ;;  %vm652_vm6 = vcmp.eq.f32.partialorder %v2267_v10, inf  ;;  %v353_v53 = vpop.permute.xlu1 %352 }
 0x192   :  { %1249 = vrsqrt.f32 %v2303_v26  ;;  %v651_v8 = vmul.f32 %v1240_v42, %v2267_v10  ;;  %vm654_vm7 = vcmp.eq.f32.partialorder %v2267_v10, 0.0  ;;  %v939_v4 = vmul.f32 %v1242_v41, %v2269_v43 }
 0x193   :  { %v469_v39 = vmul.f32 %v405_v19, %v405_v19  ;;  %v655_v12 = vand.u32 2147483648, %v2267_v10  ;;  %vm940_vm8 = vcmp.eq.f32.partialorder %v2269_v43, inf  ;;  %v757_v60 = vmul.f32 %v437_v50, %v437_v50 }
 0x194   :  { %v406_v49 = vadd.f32 %v349_v24, %v1689_v46  ;;  %v1040_v14 = vadd.f32 %v930_v15, %v642_v55  ;;  %v646_v61 = vsel %vm645_vm1, %v2240_v0, %v644_v28  ;;  %v934_v36 = vsel %vm933_vm3, %v2246_v30, %v932_v62 }
 0x195   :  { %v2338_v29 = vadd.f32 1e-06, %v469_v39  ;;  %v1244_v6 = vpop.eup %1243  ;;  %vm942_vm9 = vcmp.eq.f32.partialorder %v2269_v43, 0.0  ;;  %v943_v58 = vand.u32 2147483648, %v2269_v43  ;;  %vm659_vm10 = vcmp.eq.f32.partialorder %v2287_v7, inf  ;;  %v355_v39 = vpop.permute.xlu0 %354 }
 0x196   :  { %v2343_v48 = vadd.f32 1e-06, %v757_v60  ;;  %v653_v63 = vsel %vm652_vm6, %v2267_v10, %v651_v8  ;;  %v941_v52 = vsel %vm940_vm8, %v2269_v43, %v939_v4  ;;  %v438_v22 = vsub.f32 %v349_v24, %v1689_v46 }
 0x197   :  { %v470_v1 = vmul.f32 %v406_v49, %v406_v49  ;;  %v649_v5 = vsel %vm647_vm4, %v648_v51, %v646_v61  ;;  %v937_v59 = vsel %vm935_vm5, %v936_v40, %v934_v36  ;;  %vm661_vm11 = vcmp.eq.f32.partialorder %v2287_v7, 0.0 }
 0x198   :  { %v407_v35 = vadd.f32 %v351_v44, %v1686_v27  ;;  %v1246_v34 = vpop.eup %1245  ;;  %v1078_v54 = vsel %vm1059_vm2, %v1040_v14, 0.0  ;;  %v658_v33 = vmul.f32 %v1244_v6, %v2287_v7  ;;  %v662_v21 = vand.u32 2147483648, %v2287_v7 }
 0x199   :  { %1251 = vrsqrt.f32 %v2338_v29  ;;  %v656_v46 = vsel %vm654_vm7, %v655_v12, %v653_v63  ;;  %v944_v0 = vsel %vm942_vm9, %v943_v58, %v941_v52  ;;  %v946_v30 = vmul.f32 %v1246_v34, %v2297_v31 }
 0x19a   :  { %1253 = vrsqrt.f32 %v2343_v48  ;;  %v1041_v57 = vadd.f32 %v937_v59, %v649_v5  ;;  %v2367_v17 = vadd.f32 1e-06, %v470_v1  ;;  %v758_v25 = vmul.f32 %v438_v22, %v438_v22  ;;  %v357_v59 = vpop.permute.xlu1 %356 }
 0x19b   :  { %v1248_v2 = vpop.eup %1247  ;;  %v439_v32 = vsub.f32 %v351_v44, %v1686_v27  ;;  %v1109_v18 = vadd.f32 %v1108_v13, %v1078_v54  ;;  %vm947_vm12 = vcmp.eq.f32.partialorder %v2297_v31, inf  ;;  %vm949_vm13 = vcmp.eq.f32.partialorder %v2297_v31, 0.0 }
 0x19c   :  { %v1250_v16 = vpop.eup %1249  ;;  %v471_v10 = vmul.f32 %v407_v35, %v407_v35  ;;  %v1042_v43 = vadd.f32 %v944_v0, %v656_v46  ;;  %v660_v20 = vsel %vm659_vm10, %v2287_v7, %v658_v33  ;;  %v950_v51 = vand.u32 2147483648, %v2297_v31  ;;  %v359_v33 = vpop.permute.xlu0 %358 }
 0x19d   :  { %vm666_vm14 = vcmp.eq.f32.partialorder %v2301_v45, inf  ;;  %v948_v23 = vsel %vm947_vm12, %v2297_v31, %v946_v30  ;;  %v665_v27 = vmul.f32 %v1248_v2, %v2301_v45  ;;  %v953_v19 = vmul.f32 %v1250_v16, %v2303_v26 }
 0x19e   :  { %v2380_v9 = vadd.f32 1e-06, %v758_v25  ;;  %v1079_v40 = vsel %vm1059_vm2, %v1041_v57, 0.0  ;;  %vm668_vm15 = vcmp.eq.f32.partialorder %v2301_v45, 0.0  ;;  %1255 = vrsqrt.f32 %v2367_v17 }
 0x19f   :  { %v759_v50 = vmul.f32 %v439_v32, %v439_v32  ;;  %v2387_v42 = vadd.f32 1e-06, %v471_v10  ;;  %v408_v13 = vadd.f32 %v353_v53, %v1701_v56  ;;  %v440_v28 = vsub.f32 %v353_v53, %v1701_v56 }
 0x1a0   :  { %1257 = vrsqrt.f32 %v2380_v9  ;;  %v1110_v62 = vadd.f32 %v1109_v18, %v1079_v40  ;;  %v663_v24 = vsel %vm661_vm11, %v662_v21, %v660_v20  ;;  %v951_v41 = vsel %vm949_vm13, %v950_v51, %v948_v23 }
 0x1a1   :  { %vm954_vm0 = vcmp.eq.f32.partialorder %v2303_v26, inf  ;;  %v1080_v55 = vsel %vm1059_vm2, %v1042_v43, 0.0  ;;  %v667_v15 = vsel %vm666_vm14, %v2301_v45, %v665_v27  ;;  %v669_v8 = vand.u32 2147483648, %v2301_v45 }
 0x1a2   :  { %v955_v56 = vsel %vm954_vm0, %v2303_v26, %v953_v19  ;;  %vm956_vm1 = vcmp.eq.f32.partialorder %v2303_v26, 0.0  ;;  %v957_v7 = vand.u32 2147483648, %v2303_v26  ;;  %vm673_vm3 = vcmp.eq.f32.partialorder %v2338_v29, inf }
 0x1a3   :  { %v1252_v4 = vpop.eup %1251  ;;  %v2406_v31 = vadd.f32 1e-06, %v759_v50  ;;  %v1043_v60 = vadd.f32 %v951_v41, %v663_v24  ;;  %vm675_vm4 = vcmp.eq.f32.partialorder %v2338_v29, 0.0  ;;  %1259 = vrsqrt.f32 %v2387_v42 }
 0x1a4   :  { %v1254_v12 = vpop.eup %1253  ;;  %v472_v49 = vmul.f32 %v408_v13, %v408_v13  ;;  %v760_v14 = vmul.f32 %v440_v28, %v440_v28  ;;  %v1111_v61 = vadd.f32 %v1110_v62, %v1080_v55  ;;  %v670_v36 = vsel %vm668_vm15, %v669_v8, %v667_v15  ;;  %v361_v55 = vpop.permute.xlu1 %360 }
 0x1a5   :  { %v958_v44 = vsel %vm956_vm1, %v957_v7, %v955_v56  ;;  %1261 = vrsqrt.f32 %v2406_v31  ;;  %v672_v26 = vmul.f32 %v1252_v4, %v2338_v29  ;;  %v676_v6 = vand.u32 2147483648, %v2338_v29 }
 0x1a6   :  { %vm961_vm5 = vcmp.eq.f32.partialorder %v2343_v48, inf  ;;  %v2416_v58 = vadd.f32 1e-06, %v472_v49  ;;  %v960_v63 = vmul.f32 %v1254_v12, %v2343_v48  ;;  %vm963_vm6 = vcmp.eq.f32.partialorder %v2343_v48, 0.0 }
 0x1a7   :  { %v2420_v52 = vadd.f32 1e-06, %v760_v14  ;;  %v409_v45 = vadd.f32 %v355_v39, %v1698_v37  ;;  %v1081_v22 = vsel %vm1059_vm2, %v1043_v60, 0.0  ;;  %v1044_v1 = vadd.f32 %v958_v44, %v670_v36 }
 0x1a8   :  { %v964_v5 = vand.u32 2147483648, %v2343_v48  ;;  %vm680_vm7 = vcmp.eq.f32.partialorder %v2367_v17, inf  ;;  %v1256_v35 = vpop.eup %1255  ;;  %v1112_v34 = vadd.f32 %v1111_v61, %v1081_v22  ;;  %v683_v54 = vand.u32 2147483648, %v2367_v17  ;;  %v2667_v61 = vld [vmem:[#allocation12_spill] sm:$0xff] }
 0x1a9   :  { %vm968_vm8 = vcmp.eq.f32.partialorder %v2380_v9, inf  ;;  %1263 = vrsqrt.f32 %v2416_v58  ;;  %v674_v46 = vsel %vm673_vm3, %v2338_v29, %v672_v26  ;;  %vm682_vm9 = vcmp.eq.f32.partialorder %v2367_v17, 0.0 }
 0x1aa   :  { %v1258_v21 = vpop.eup %1257  ;;  %v971_v0 = vand.u32 2147483648, %v2380_v9  ;;  %1265 = vrsqrt.f32 %v2420_v52  ;;  %v441_v30 = vsub.f32 %v355_v39, %v1698_v37  ;;  %v962_v2 = vsel %vm961_vm5, %v2343_v48, %v960_v63  ;;  %v363_v63 = vpop.permute.xlu0 %362 }
 0x1ab   :  { %vm970_vm10 = vcmp.eq.f32.partialorder %v2380_v9, 0.0  ;;  %v473_v57 = vmul.f32 %v409_v45, %v409_v45  ;;  %v410_v25 = vadd.f32 %v357_v59, %v1713_v3  ;;  %v442_v32 = vsub.f32 %v357_v59, %v1713_v3 }
 0x1ac   :  { %v1082_v16 = vsel %vm1059_vm2, %v1044_v1, 0.0  ;;  %v679_v18 = vmul.f32 %v1256_v35, %v2367_v17  ;;  %v761_v10 = vmul.f32 %v441_v30, %v441_v30  ;;  %v411_v43 = vadd.f32 %v359_v33, %v1710_v47 }
 0x1ad   :  { %v677_v37 = vsel %vm675_vm4, %v676_v6, %v674_v46  ;;  %v967_v20 = vmul.f32 %v1258_v21, %v2380_v9  ;;  %vm687_vm11 = vcmp.eq.f32.partialorder %v2387_v42, inf  ;;  %v2451_v51 = vadd.f32 1e-06, %v473_v57  ;;  %v1260_v53 = vpop.eup %1259  ;;  %v2668_v21 = vld [vmem:[#allocation11_spill] sm:$0xff] }
 0x1ae   :  { %v965_v3 = vsel %vm963_vm6, %v964_v5, %v962_v2  ;;  %v2455_v23 = vadd.f32 1e-06, %v761_v10  ;;  %v474_v27 = vmul.f32 %v410_v25, %v410_v25  ;;  %v762_v19 = vmul.f32 %v442_v32, %v442_v32 }
 0x1af   :  { %v1262_v40 = vpop.eup %1261  ;;  %v2457_v50 = vadd.f32 %v1112_v34, %v1082_v16  ;;  %vm689_vm12 = vcmp.eq.f32.partialorder %v2387_v42, 0.0  ;;  %v690_v29 = vand.u32 2147483648, %v2387_v42  ;;  %vm975_vm13 = vcmp.eq.f32.partialorder %v2406_v31, inf }
 0x1b0   :  { %v475_v13 = vmul.f32 %v411_v43, %v411_v43  ;;  %v681_v28 = vsel %vm680_vm7, %v2367_v17, %v679_v18  ;;  %vm977_vm14 = vcmp.eq.f32.partialorder %v2406_v31, 0.0  ;;  %1267 = vrsqrt.f32 %v2451_v51 }
 0x1b1   :  { %v443_v48 = vsub.f32 %v359_v33, %v1710_v47  ;;  %v1045_v62 = vadd.f32 %v965_v3, %v677_v37  ;;  %v969_v24 = vsel %vm968_vm8, %v2380_v9, %v967_v20  ;;  %v686_v41 = vmul.f32 %v1260_v53, %v2387_v42 }
 0x1b2   :  { %1269 = vrsqrt.f32 %v2455_v23  ;;  %v974_v15 = vmul.f32 %v1262_v40, %v2406_v31  ;;  %v978_v8 = vand.u32 2147483648, %v2406_v31  ;;  %v2475_v56 = vadd.f32 1e-06, %v474_v27 }
 0x1b3   :  { %v2477_v4 = vadd.f32 1e-06, %v762_v19  ;;  %v1264_v7 = vpop.eup %1263  ;;  %v684_v47 = vsel %vm682_vm9, %v683_v54, %v681_v28  ;;  %vm694_vm15 = vcmp.eq.f32.partialorder %v2416_v58, inf  ;;  %v697_v39 = vand.u32 2147483648, %v2416_v58 }
 0x1b4   :  { %v2483_v12 = vadd.f32 1e-06, %v475_v13  ;;  %v1266_v60 = vpop.eup %1265  ;;  %v972_v49 = vsel %vm970_vm10, %v971_v0, %v969_v24  ;;  %vm696_vm0 = vcmp.eq.f32.partialorder %v2416_v58, 0.0  ;;  %1271 = vrsqrt.f32 %v2475_v56 }
 0x1b5   :  { %v763_v14 = vmul.f32 %v443_v48, %v443_v48  ;;  %v412_v36 = vadd.f32 %v361_v55, %v2667_v61  ;;  %v2492_v17 = vsel %vm1059_vm2, %v1045_v62, 0.0  ;;  %v688_v44 = vsel %vm687_vm11, %v2387_v42, %v686_v41 }
 0x1b6   :  { %1273 = vrsqrt.f32 %v2477_v4  ;;  %v444_v9 = vsub.f32 %v361_v55, %v2667_v61  ;;  %v976_v26 = vsel %vm975_vm13, %v2406_v31, %v974_v15  ;;  %v693_v6 = vmul.f32 %v1264_v7, %v2416_v58 }
 0x1b7   :  { %vm982_vm1 = vcmp.eq.f32.partialorder %v2420_v52, inf  ;;  %vm984_vm3 = vcmp.eq.f32.partialorder %v2420_v52, 0.0  ;;  %v1046_v45 = vadd.f32 %v972_v49, %v684_v47  ;;  %v981_v22 = vmul.f32 %v1266_v60, %v2420_v52 }
 0x1b8   :  { %v985_v1 = vand.u32 2147483648, %v2420_v52  ;;  %1275 = vrsqrt.f32 %v2483_v12  ;;  %v691_v5 = vsel %vm689_vm12, %v690_v29, %v688_v44  ;;  %vm701_vm4 = vcmp.eq.f32.partialorder %v2451_v51, inf }
 0x1b9   :  { %v704_v59 = vand.u32 2147483648, %v2451_v51  ;;  %v2512_v35 = vadd.f32 1e-06, %v763_v14  ;;  %v476_v34 = vmul.f32 %v412_v36, %v412_v36  ;;  %v979_v54 = vsel %vm977_vm14, %v978_v8, %v976_v26 }
 0x1ba   :  { %v764_v33 = vmul.f32 %v444_v9, %v444_v9  ;;  %v413_v46 = vadd.f32 %v363_v63, %v2668_v21  ;;  %v445_v0 = vsub.f32 %v363_v63, %v2668_v21  ;;  %v1268_v30 = vpop.eup %1267  ;;  %v695_v42 = vsel %vm694_vm15, %v2416_v58, %v693_v6 }
 0x1bb   :  { %vm989_vm5 = vcmp.eq.f32.partialorder %v2455_v23, inf  ;;  %v992_v2 = vand.u32 2147483648, %v2455_v23  ;;  %1277 = vrsqrt.f32 %v2512_v35  ;;  %v983_v31 = vsel %vm982_vm1, %v2420_v52, %v981_v22 }
 0x1bc   :  { %v1270_v57 = vpop.eup %1269  ;;  %vm703_vm6 = vcmp.eq.f32.partialorder %v2451_v51, 0.0  ;;  %v2528_v25 = vadd.f32 1e-06, %v476_v34  ;;  %v2530_v32 = vadd.f32 1e-06, %v764_v33  ;;  %v477_v16 = vmul.f32 %v413_v46, %v413_v46 }
 0x1bd   :  { %v1047_v18 = vadd.f32 %v979_v54, %v691_v5  ;;  %vm991_vm7 = vcmp.eq.f32.partialorder %v2455_v23, 0.0  ;;  %vm708_vm8 = vcmp.eq.f32.partialorder %v2475_v56, inf  ;;  %v711_v10 = vand.u32 2147483648, %v2475_v56 }
 0x1be   :  { %v765_v43 = vmul.f32 %v445_v0, %v445_v0  ;;  %v698_v37 = vsel %vm696_vm0, %v697_v39, %v695_v42  ;;  %v700_v20 = vmul.f32 %v1268_v30, %v2451_v51  ;;  %vm710_vm9 = vcmp.eq.f32.partialorder %v2475_v56, 0.0  ;;  %v1272_v53 = vpop.eup %1271 }
 0x1bf   :  { %vm996_vm10 = vcmp.eq.f32.partialorder %v2477_v4, inf  ;;  %1279 = vrsqrt.f32 %v2528_v25  ;;  %v986_v3 = vsel %vm984_vm3, %v985_v1, %v983_v31  ;;  %v988_v27 = vmul.f32 %v1270_v57, %v2455_v23 }
 0x1c0   :  { %1281 = vrsqrt.f32 %v2530_v32  ;;  %v2545_v19 = vadd.f32 1e-06, %v477_v16  ;;  %v1274_v58 = vpop.eup %1273  ;;  %v707_v40 = vmul.f32 %v1272_v53, %v2475_v56  ;;  %vm998_vm11 = vcmp.eq.f32.partialorder %v2477_v4, 0.0 }
 0x1c1   :  { %v999_v29 = vand.u32 2147483648, %v2477_v4  ;;  %v2550_v13 = vadd.f32 1e-06, %v765_v43  ;;  %v995_v28 = vmul.f32 %v1274_v58, %v2477_v4  ;;  %vm715_vm12 = vcmp.eq.f32.partialorder %v2483_v12, inf }
 0x1c2   :  { %v718_v52 = vand.u32 2147483648, %v2483_v12  ;;  %1283 = vrsqrt.f32 %v2545_v19  ;;  %v1276_v48 = vpop.eup %1275  ;;  %v702_v62 = vsel %vm701_vm4, %v2451_v51, %v700_v20  ;;  %vm717_vm13 = vcmp.eq.f32.partialorder %v2483_v12, 0.0 }
 0x1c3   :  { %vm1003_vm14 = vcmp.eq.f32.partialorder %v2512_v35, inf  ;;  %1285 = vrsqrt.f32 %v2550_v13  ;;  %v1048_v24 = vadd.f32 %v986_v3, %v698_v37  ;;  %v990_v41 = vsel %vm989_vm5, %v2455_v23, %v988_v27 }
 0x1c4   :  { %vm1005_vm15 = vcmp.eq.f32.partialorder %v2512_v35, 0.0  ;;  %v1006_v55 = vand.u32 2147483648, %v2512_v35  ;;  %v1084_v15 = vsel %vm1059_vm2, %v1046_v45, 0.0  ;;  %v709_v8 = vsel %vm708_vm8, %v2475_v56, %v707_v40 }
 0x1c5   :  { %v997_v7 = vsel %vm996_vm10, %v2477_v4, %v995_v28  ;;  %v714_v47 = vmul.f32 %v1276_v48, %v2483_v12  ;;  %vm722_vm0 = vcmp.eq.f32.partialorder %v2528_v25, inf  ;;  %v1278_v39 = vpop.eup %1277  ;;  %v725_v60 = vand.u32 2147483648, %v2528_v25 }
 0x1c6   :  { %vm1010_vm1 = vcmp.eq.f32.partialorder %v2530_v32, inf  ;;  %v1013_v49 = vand.u32 2147483648, %v2530_v32  ;;  %v705_v14 = vsel %vm703_vm6, %v704_v59, %v702_v62  ;;  %v1002_v61 = vmul.f32 %v1278_v39, %v2512_v35 }
 0x1c7   :  { %vm724_vm3 = vcmp.eq.f32.partialorder %v2528_v25, 0.0  ;;  %v993_v36 = vsel %vm991_vm7, %v992_v2, %v990_v41  ;;  %v1114_v44 = vadd.f32 %v2457_v50, %v2492_v17  ;;  %v712_v9 = vsel %vm710_vm9, %v711_v10, %v709_v8 }
 0x1c8   :  { %vm729_vm4 = vcmp.eq.f32.partialorder %v2545_v19, inf  ;;  %vm731_vm5 = vcmp.eq.f32.partialorder %v2545_v19, 0.0  ;;  %v1000_v51 = vsel %vm998_vm11, %v999_v29, %v997_v7  ;;  %v716_v6 = vsel %vm715_vm12, %v2483_v12, %v714_v47 }
 0x1c9   :  { %v1280_v26 = vpop.eup %1279  ;;  %v1004_v23 = vsel %vm1003_vm14, %v2512_v35, %v1002_v61  ;;  %v732_v50 = vand.u32 2147483648, %v2545_v19  ;;  %v1115_v56 = vadd.f32 %v1114_v44, %v1084_v15  ;;  %vm1012_vm6 = vcmp.eq.f32.partialorder %v2530_v32, 0.0 }
 0x1ca   :  { %v1282_v17 = vpop.eup %1281  ;;  %v721_v63 = vmul.f32 %v1280_v26, %v2528_v25  ;;  %v1049_v45 = vadd.f32 %v993_v36, %v705_v14  ;;  %v1085_v4 = vsel %vm1059_vm2, %v1047_v18, 0.0  ;;  %v1050_v1 = vadd.f32 %v1000_v51, %v712_v9 }
 0x1cb   :  { %v1009_v22 = vmul.f32 %v1282_v17, %v2530_v32  ;;  %v1086_v5 = vsel %vm1059_vm2, %v1048_v24, 0.0  ;;  %v1116_v59 = vadd.f32 %v1115_v56, %v1085_v4  ;;  %v719_v54 = vsel %vm717_vm13, %v718_v52, %v716_v6 }
 0x1cc   :  { %v1284_v34 = vpop.eup %1283  ;;  %v723_v33 = vsel %vm722_vm0, %v2528_v25, %v721_v63  ;;  %v1007_v21 = vsel %vm1005_vm15, %v1006_v55, %v1004_v23  ;;  %vm1017_vm7 = vcmp.eq.f32.partialorder %v2550_v13, inf  ;;  %v1020_v42 = vand.u32 2147483648, %v2550_v13 }
 0x1cd   :  { %v1286_v46 = vpop.eup %1285  ;;  %v728_v0 = vmul.f32 %v1284_v34, %v2545_v19  ;;  %v726_v30 = vsel %vm724_vm3, %v725_v60, %v723_v33  ;;  %v1011_v12 = vsel %vm1010_vm1, %v2530_v32, %v1009_v22  ;;  %v1087_v57 = vsel %vm1059_vm2, %v1049_v45, 0.0 }
 0x1ce   :  { %v1016_v2 = vmul.f32 %v1286_v46, %v2550_v13  ;;  %v1014_v35 = vsel %vm1012_vm6, %v1013_v49, %v1011_v12  ;;  %v1117_v31 = vadd.f32 %v1116_v59, %v1086_v5  ;;  %v1051_v16 = vadd.f32 %v1007_v21, %v719_v54 }
 0x1cf   :  { %v730_v25 = vsel %vm729_vm4, %v2545_v19, %v728_v0  ;;  %v1052_v18 = vadd.f32 %v1014_v35, %v726_v30  ;;  %v1088_v10 = vsel %vm1059_vm2, %v1050_v1, 0.0  ;;  %vm1019_vm8 = vcmp.eq.f32.partialorder %v2550_v13, 0.0 }
 0x1d0   :  { %v733_v43 = vsel %vm731_vm5, %v732_v50, %v730_v25  ;;  %v1018_v37 = vsel %vm1017_vm7, %v2550_v13, %v1016_v2  ;;  %v1118_v32 = vadd.f32 %v1117_v31, %v1087_v57  ;;  %v1089_v27 = vsel %vm1059_vm2, %v1051_v16, 0.0 }
 0x1d1   :  { %v1021_v20 = vsel %vm1019_vm8, %v1020_v42, %v1018_v37  ;;  %v1090_v58 = vsel %vm1059_vm2, %v1052_v18, 0.0  ;;  %vm1131_vm9 = vcmp.eq.s32.totalorder %v1772_v11, 0 }
 0x1d2   :  { %v1119_v53 = vadd.f32 %v1118_v32, %v1088_v10  ;;  %v1053_v3 = vadd.f32 %v1021_v20, %v733_v43 }
 0x1d4   :  { %v1120_v40 = vadd.f32 %v1119_v53, %v1089_v27  ;;  %v1091_v19 = vsel %vm1059_vm2, %v1053_v3, 0.0 }
 0x1d6   :  { %v1121_v29 = vadd.f32 %v1120_v40, %v1090_v58 }
 0x1d8   :  { %v1122_v28 = vadd.f32 %v1121_v29, %v1091_v19 }
 0x1da   :  { %v1123_v52 = vrot.slane %v1122_v28, 4 }
 0x1dc   :  { %v1124_v48 = vadd.f32 %v1123_v52, %v1122_v28 }
 0x1de   :  { %v1125_v62 = vrot.slane %v1124_v48, 2 }
 0x1e0   :  { %v1126_v13 = vadd.f32 %v1125_v62, %v1124_v48 }
 0x1e2   :  { %v1127_v24 = vrot.slane %v1126_v13, 1 }
 0x1e4   :  { %v1128_v41 = vadd.f32 %v1127_v24, %v1126_v13 }
 0x1e6   :  { %v1132_v55 = vsel %vm1131_vm9, %v1128_v41, 0.0 }
 0x1e7   :  { %1133 = vst [vmem:[#allocation7] sm:$0xff] %v1132_v55 }
 0x1e8   :  { %1342 = shalt.err (!%p1339_p6)
}
 0x1e9   :  { %s1343_s12 = scalar_lea.hbm %s2658_s2, 128 }
 0x1ea   :  { %p1344_p7 = scmp.ne.s32.totalorder %s2658_s2, %s1343_s12  ;;  %p1347_p8 = scmp.lt.u32.totalorder %s1343_s12, %s2658_s2 }
 0x1ec   :  { %p1349_p9 = pnand %p1347_p8, %p1344_p7 }
 0x1ee   :  { %1352 = shalt.err (!%p1349_p9)
}
 0x1ef   :  { %1143 = dma.vmem_to_hbm [thread:$0]  %s1141_s8, 128, %s2658_s2, [#allocation4]  }
 0x1f0   :  { %1357 = dma.done.wait [#allocation4], 128  }
 0x1f1   :  { %1358 = vsyncadd [#allocation4], 4294967168 }
 0x1f2   :  { %1147 = vsyncpa [#allocation3], 1 }
 0x1f3   :  { %1148 = vsyncpa [#allocation6], 1 }
 0x1f4   :  { %1149 = vsyncpa [#allocation4], 1 }

</bundles_post_ra>
